<compile_context>
chip_gen: v7x
topology: tpu7x:2x2x1
jax: 0.10.0
libtpu: 0.0.40
codegen_flags: <defaults>
</compile_context>

<pallas_src>
import jax
import jax.numpy as jnp
import numpy as np
from jax.experimental import pallas as pl
from jax.experimental.pallas import tpu as pltpu

# MXU operand dtype: bf16 is native on v5e/v6e/v7x MXUs.  All accumulation and all
# BN / ReLU / pool / sigmoid epilogues stay in float32.
MXU_DTYPE = jnp.bfloat16


def _vmem_limit_bytes():
    """~3/4 of physical VMEM (96 MiB on v5e/v6e, 48 MiB on v7x), clamped to [32, 100] MiB."""
    cap = 64 * 1024 * 1024
    try:
        cap = int(getattr(pltpu.get_tpu_info(), "vmem_capacity_bytes", cap))
    except Exception:
        pass
    return max(32 * 1024 * 1024, min((cap // 4) * 3, 100 * 1024 * 1024))


# ----------------------------------------------------------------------------
# Weight preprocessing (plain XLA, tiny): fold 3x3 taps / channels / pad=1 column
# halo into per-row-offset banded matrices so each conv is 3 MXU matmuls.
# ----------------------------------------------------------------------------
def _band_matrices(w, W, stride):
    """w: (3, 3, Cin, Cout).  Returns B: (3, W*Cin, Wout*Cout), Wout = W // stride, with

        y[i, j*Cout + o] = sum_dy ( x_row[stride*i + dy - 1] @ B[dy] )[j*Cout + o]

    where x_row[r] is the flattened (W*Cin,) image row r and out-of-range rows are zero.
    pad=1 columns fall outside [0, W) and therefore simply vanish from the band."""
    Cin, Cout = w.shape[2], w.shape[3]
    Wout = W // stride
    j = jnp.arange(Wout)
    bands = []
    for dy in range(3):
        blk = jnp.zeros((W, Cin, Wout, Cout), jnp.float32)
        for dx in range(3):
            # E[p, jj] = 1  iff  p == stride*jj + dx - 1   (out-of-range -> all-zero column)
            e = jax.nn.one_hot(stride * j + (dx - 1), W, dtype=jnp.float32).T
            blk = blk + jnp.einsum("pj,co->pcjo", e, w[dy, dx].astype(jnp.float32))
        bands.append(blk.reshape(W * Cin, Wout * Cout))
    return jnp.stack(bands, axis=0).astype(MXU_DTYPE)


def _tile_lane(v, reps):
    """(C,) per-channel vector -> (1, reps*C) lane row matching the (.., W*C) layout."""
    v = v.astype(jnp.float32)
    return jnp.tile(v, reps).reshape(1, reps * v.shape[0])


# ----------------------------------------------------------------------------
# The fused kernel: conv1 -> conv2 -> pool+Attition gate -> gated out -> stride-2 conv.
# ----------------------------------------------------------------------------
def _downsample_fused_kernel(x_ref, band1_ref, s1_ref, b1_ref,
                             band2_ref, s2_ref, b2_ref,
                             band3_ref, s3_ref, b3_ref,
                             attw_ref, attb_ref, bcast_ref,
                             out_ref, out2_ref):
    # x_ref:     (1, H, W*Cin)  f32 input slab for one batch element
    # bandK_ref: (3, K, Nout)   bf16 banded conv weights (one slice per row offset dy)
    # sK/bK_ref: (1, Nout)      folded BN scale / bias, tiled across W (resp. Wo)
    # attw_ref:  (W*C, C) f32   pool * fc1 * fc2 folded;  attb_ref: (1, C) folded bias
    # bcast_ref: (C, W*C) f32   per-channel gate -> lane-row broadcast matrix
    # out_ref:   (1, H, W*C)    gated activations (module output `out`), lane-dense
    # out2_ref:  (1, Ho, Wo*C)  downsampled output (module output `out_2`)

    def band_conv(v, band_ref, s_ref, b_ref, stride):
        # v: (rows_in, K) f32.  Output row i = sum_dy v[stride*i + dy - 1] @ band[dy];
        # out-of-range rows contribute zero (pad=1).  Row selection / shifting is done
        # with a 0/1 selection matmul (exact, MXU) -- no masked VMEM stores, no scratch.
        rows_in = v.shape[0]
        rows_out = rows_in // stride
        vb = v.astype(MXU_DTYPE)
        row_i = jax.lax.broadcasted_iota(jnp.int32, (rows_out, rows_in), 0)
        row_k = jax.lax.broadcasted_iota(jnp.int32, (rows_out, rows_in), 1)
        acc = None
        for dy in range(3):
            sel = (row_k == stride * row_i + (dy - 1)).astype(MXU_DTYPE)
            lhs = jnp.dot(sel, vb, preferred_element_type=jnp.float32).astype(MXU_DTYPE)
            term = jnp.dot(lhs, band_ref[dy], preferred_element_type=jnp.float32)
            acc = term if acc is None else acc + term
        # Folded BN + ReLU epilogue in f32.
        return jnp.maximum(acc * s_ref[...] + b_ref[...], 0.0)

    x = x_ref[0]                                                   # (H, W*Cin) f32
    h1 = band_conv(x, band1_ref, s1_ref, b1_ref, 1)                # (H, W*C)
    h2 = band_conv(h1, band2_ref, s2_ref, b2_ref, 1)               # (H, W*C)

    # Attition gate: global-average-pool + fc1 + fc2 folded into one affine map.
    row_sum = jnp.sum(h2, axis=0, keepdims=True)                   # (1, W*C)
    a = jax.nn.sigmoid(jnp.dot(row_sum, attw_ref[...],
                               preferred_element_type=jnp.float32) + attb_ref[...])  # (1, C)
    a_row = jnp.dot(a, bcast_ref[...], preferred_element_type=jnp.float32)           # (1, W*C)

    g = h2 * a_row                                                 # gated = module output `out`
    out_ref[0] = g

    # Stride-2 conv computed directly at (H/2, W/2): the stride-2 row selection is the
    # same 0/1 selection matmul, the stride-2 column structure lives in band3.
    out2_ref[0] = band_conv(g, band3_ref, s3_ref, b3_ref, 2)       # (Ho, Wo*C)


# ----------------------------------------------------------------------------
# Wrappers
# ----------------------------------------------------------------------------
def downsample_layer_forward_nhwc(x_nhwc, p):
    """Recommended NHWC-native entry point (no layout transposes).  Returns (out, out_2)."""
    N, H, W, Cin = x_nhwc.shape
    C = p["w1"].shape[-1]
    assert H % 2 == 0 and W % 2 == 0, "stride-2 downsample expects even H, W"
    Ho, Wo = H // 2, W // 2

    # One-time weight preprocessing (tiny plain-XLA ops on weights only).
    band1 = _band_matrices(p["w1"], W, 1)                          # (3, W*Cin, W*C)
    band2 = _band_matrices(p["w2"], W, 1)                          # (3, W*C,   W*C)
    band3 = _band_matrices(p["w3"], W, 2)                          # (3, W*C,   Wo*C)
    s1, b1 = _tile_lane(p["s1"], W), _tile_lane(p["b1"], W)
    s2, b2 = _tile_lane(p["s2"], W), _tile_lane(p["b2"], W)
    s3, b3 = _tile_lane(p["s3"], Wo), _tile_lane(p["b3"], Wo)
    # Attition: fc2(fc1(.)) is affine (no nonlinearity in between) -> fold fc1@fc2, and
    # fold the global-average-pool reduction matrix into its weight.
    eye_c = jnp.eye(C, dtype=jnp.float32)
    fc12 = jnp.dot(p["fc1_w"].astype(jnp.float32), p["fc2_w"].astype(jnp.float32))   # (C, C)
    att_w = jnp.dot(jnp.tile(eye_c, (W, 1)) / float(H * W), fc12)                    # (W*C, C)
    att_b = (jnp.dot(p["fc1_b"].astype(jnp.float32), p["fc2_w"].astype(jnp.float32))
             + p["fc2_b"].astype(jnp.float32)).reshape(1, C)
    bcast = jnp.tile(eye_c, (1, W))                                                  # (C, W*C)

    x2 = x_nhwc.reshape(N, H, W * Cin)          # free reshape: W and C merged into lanes

    out_flat, out2_flat = pl.pallas_call(
        _downsample_fused_kernel,
        out_shape=(jax.ShapeDtypeStruct((N, H, W * C), jnp.float32),
                   jax.ShapeDtypeStruct((N, Ho, Wo * C), jnp.float32)),
        grid_spec=pltpu.PrefetchScalarGridSpec(
            num_scalar_prefetch=0,
            grid=(N,),
            in_specs=[
                pl.BlockSpec((1, H, W * Cin), lambda n: (n, 0, 0)),
                pl.BlockSpec((3, W * Cin, W * C), lambda n: (0, 0, 0)),
                pl.BlockSpec((1, W * C), lambda n: (0, 0)),
                pl.BlockSpec((1, W * C), lambda n: (0, 0)),
                pl.BlockSpec((3, W * C, W * C), lambda n: (0, 0, 0)),
                pl.BlockSpec((1, W * C), lambda n: (0, 0)),
                pl.BlockSpec((1, W * C), lambda n: (0, 0)),
                pl.BlockSpec((3, W * C, Wo * C), lambda n: (0, 0, 0)),
                pl.BlockSpec((1, Wo * C), lambda n: (0, 0)),
                pl.BlockSpec((1, Wo * C), lambda n: (0, 0)),
                pl.BlockSpec((W * C, C), lambda n: (0, 0)),
                pl.BlockSpec((1, C), lambda n: (0, 0)),
                pl.BlockSpec((C, W * C), lambda n: (0, 0)),
            ],
            out_specs=[
                pl.BlockSpec((1, H, W * C), lambda n: (n, 0, 0)),
                pl.BlockSpec((1, Ho, Wo * C), lambda n: (n, 0, 0)),
            ],
        ),
        compiler_params=pltpu.CompilerParams(
            dimension_semantics=("parallel",),
            vmem_limit_bytes=_vmem_limit_bytes()),
    )(x2, band1, s1, b1, band2, s2, b2, band3, s3, b3, att_w, att_b, bcast)

    return out_flat.reshape(N, H, W, C), out2_flat.reshape(N, Ho, Wo, C)


def downsample_layer_forward(x_nchw, p):
    """PyTorch-compatible NCHW wrapper around the NHWC-native forward."""
    # TODO(synk): at production sizes keep the surrounding model NHWC and call
    # downsample_layer_forward_nhwc directly -- these transposes are pure HBM glue.
    x = jnp.transpose(x_nchw, (0, 2, 3, 1))
    out, out2 = downsample_layer_forward_nhwc(x, p)
    return jnp.transpose(out, (0, 3, 1, 2)), jnp.transpose(out2, (0, 3, 1, 2))


# ----------------------------------------------------------------------------
# Deterministic synthetic parameter initialization (shapes from __init__)
# ----------------------------------------------------------------------------
def init_params(key, in_ch, out_ch, dit=8, eps=1e-5):
    ks = list(jax.random.split(key, 16))
    p = {}

    def conv_block(name, cin, cout, k_w, k_bn):
        w = jax.random.normal(k_w, (3, 3, cin, cout), jnp.float32) * 0.15
        kb = jax.random.split(k_bn, 5)
        conv_b = jax.random.normal(kb[0], (cout,), jnp.float32) * 0.05
        gamma = 1.0 + 0.2 * jax.random.normal(kb[1], (cout,), jnp.float32)
        beta = 0.1 * jax.random.normal(kb[2], (cout,), jnp.float32)
        mean = 0.1 * jax.random.normal(kb[3], (cout,), jnp.float32)
        var = 0.5 + jax.random.uniform(kb[4], (cout,), jnp.float32)
        scale = gamma / jnp.sqrt(var + eps)
        bias = beta + (conv_b - mean) * scale
        p["w" + name] = w
        p["s" + name] = scale
        p["b" + name] = bias

    conv_block("1", in_ch, out_ch, ks[0], ks[1])   # Conv_BN_ReLU_2[0..2]
    conv_block("2", out_ch, out_ch, ks[2], ks[3])  # Conv_BN_ReLU_2[3..5]
    conv_block("3", out_ch, out_ch, ks[4], ks[5])  # downsample (stride 2)

    ch = out_ch // dit
    p["fc1_w"] = jax.random.normal(ks[6], (out_ch, ch), jnp.float32) * 0.3   # torch fc1.weight.T
    p["fc1_b"] = jax.random.normal(ks[7], (ch,), jnp.float32) * 0.1
    p["fc2_w"] = jax.random.normal(ks[8], (ch, out_ch), jnp.float32) * 0.3   # torch fc2.weight.T
    p["fc2_b"] = jax.random.normal(ks[9], (out_ch,), jnp.float32) * 0.1
    return p


# ----------------------------------------------------------------------------
# Pure-JAX reference (same bf16 MXU operand rounding, f32 epilogues)
# ----------------------------------------------------------------------------
def reference_forward(x_nchw, p):
    x = jnp.transpose(x_nchw, (0, 2, 3, 1))

    def conv(x, w, s, b, stride=1):
        y = jax.lax.conv_general_dilated(
            x.astype(MXU_DTYPE), w.astype(MXU_DTYPE),
            window_strides=(stride, stride), padding=((1, 1), (1, 1)),
            dimension_numbers=("NHWC", "HWIO", "NHWC"),
            preferred_element_type=jnp.float32)
        return jnp.maximum(y * s + b, 0.0)

    h = conv(x, p["w1"], p["s1"], p["b1"])
    h = conv(h, p["w2"], p["s2"], p["b2"])
    pooled = jnp.mean(h, axis=(1, 2))                              # (N, C)
    a = jax.nn.sigmoid(
        jnp.dot(jnp.dot(pooled, p["fc1_w"]) + p["fc1_b"], p["fc2_w"]) + p["fc2_b"])
    out = h * a[:, None, None, :]
    d = conv(out, p["w3"], p["s3"], p["b3"], stride=2)
    return jnp.transpose(out, (0, 3, 1, 2)), jnp.transpose(d, (0, 3, 1, 2))


if __name__ == "__main__":
    N, in_ch, out_ch, H, W = 2, 4, 8, 16, 16                       # out_ch // 8 = 1 (Attition dit=8)
    key = jax.random.PRNGKey(0)
    k_x, k_p = jax.random.split(key)
    x = jax.random.normal(k_x, (N, in_ch, H, W), jnp.float32)      # NCHW, like PyTorch
    params = init_params(k_p, in_ch, out_ch)

    out, out_2 = jax.jit(downsample_layer_forward)(x, params)
    jax.block_until_ready((out, out_2))

    ref_out, ref_out_2 = reference_forward(x, params)
    np.testing.assert_allclose(np.asarray(out), np.asarray(ref_out), rtol=1e-2, atol=1e-2)
    np.testing.assert_allclose(np.asarray(out_2), np.asarray(ref_out_2), rtol=1e-2, atol=1e-2)

    assert out.shape == (N, out_ch, H, W)
    assert out_2.shape == (N, out_ch, H // 2, W // 2)
    print("KERNEL_OK")
</pallas_src>

<mosaic_0001>
module attributes {stable_mosaic.version = 11 : i64} {
  func.func @_downsample_fused_kernel(%arg0: i32, %arg1: memref<1x16x64xf32, #tpu.memory_space<vmem>>, %arg2: memref<3x64x128xbf16, #tpu.memory_space<vmem>>, %arg3: memref<1x128xf32, #tpu.memory_space<vmem>>, %arg4: memref<1x128xf32, #tpu.memory_space<vmem>>, %arg5: memref<3x128x128xbf16, #tpu.memory_space<vmem>>, %arg6: memref<1x128xf32, #tpu.memory_space<vmem>>, %arg7: memref<1x128xf32, #tpu.memory_space<vmem>>, %arg8: memref<3x128x64xbf16, #tpu.memory_space<vmem>>, %arg9: memref<1x64xf32, #tpu.memory_space<vmem>>, %arg10: memref<1x64xf32, #tpu.memory_space<vmem>>, %arg11: memref<128x8xf32, #tpu.memory_space<vmem>>, %arg12: memref<1x8xf32, #tpu.memory_space<vmem>>, %arg13: memref<8x128xf32, #tpu.memory_space<vmem>>, %arg14: memref<1x16x128xf32, #tpu.memory_space<vmem>>, %arg15: memref<1x8x64xf32, #tpu.memory_space<vmem>>) attributes {dimension_semantics = [#tpu.dimension_semantics<parallel>], iteration_bounds = array<i64: 2>, scalar_prefetch = 0 : i64, scratch_operands = 0 : i64, tpu.core_type = #tpu.core_type<tc>, window_params = [{transform_indices = @transform_0, window_bounds = array<i64: 1, 16, 64>}, {pipeline_mode = #tpu.pipeline_mode<synchronous>, transform_indices = @transform_1, window_bounds = array<i64: 3, 64, 128>}, {pipeline_mode = #tpu.pipeline_mode<synchronous>, transform_indices = @transform_2, window_bounds = array<i64: 1, 128>}, {pipeline_mode = #tpu.pipeline_mode<synchronous>, transform_indices = @transform_3, window_bounds = array<i64: 1, 128>}, {pipeline_mode = #tpu.pipeline_mode<synchronous>, transform_indices = @transform_4, window_bounds = array<i64: 3, 128, 128>}, {pipeline_mode = #tpu.pipeline_mode<synchronous>, transform_indices = @transform_5, window_bounds = array<i64: 1, 128>}, {pipeline_mode = #tpu.pipeline_mode<synchronous>, transform_indices = @transform_6, window_bounds = array<i64: 1, 128>}, {pipeline_mode = #tpu.pipeline_mode<synchronous>, transform_indices = @transform_7, window_bounds = array<i64: 3, 128, 64>}, {pipeline_mode = #tpu.pipeline_mode<synchronous>, transform_indices = @transform_8, window_bounds = array<i64: 1, 64>}, {pipeline_mode = #tpu.pipeline_mode<synchronous>, transform_indices = @transform_9, window_bounds = array<i64: 1, 64>}, {pipeline_mode = #tpu.pipeline_mode<synchronous>, transform_indices = @transform_10, window_bounds = array<i64: 128, 8>}, {pipeline_mode = #tpu.pipeline_mode<synchronous>, transform_indices = @transform_11, window_bounds = array<i64: 1, 8>}, {pipeline_mode = #tpu.pipeline_mode<synchronous>, transform_indices = @transform_12, window_bounds = array<i64: 8, 128>}, {transform_indices = @transform_13, window_bounds = array<i64: 1, 16, 128>}, {transform_indices = @transform_14, window_bounds = array<i64: 1, 8, 64>}]} {
    %c0 = arith.constant 0 : index
    %c0_0 = arith.constant 0 : index
    %c0_1 = arith.constant 0 : index
    %0 = vector.load %arg1[%c0, %c0_0, %c0_1] : memref<1x16x64xf32, #tpu.memory_space<vmem>>, vector<1x16x64xf32>
    %1 = vector.shape_cast %0 : vector<1x16x64xf32> to vector<16x64xf32>
    %2 = arith.truncf %1 : vector<16x64xf32> to vector<16x64xbf16>
    %3 = tpu.iota {dimensions = array<i32: 0>} : vector<16x16xi32>
    %4 = tpu.iota {dimensions = array<i32: 1>} : vector<16x16xi32>
    %c1_i32 = arith.constant 1 : i32
    %5 = vector.broadcast %c1_i32 : i32 to vector<16x16xi32>
    %6 = arith.muli %5, %3 : vector<16x16xi32>
    %c-1_i32 = arith.constant -1 : i32
    %7 = vector.broadcast %c-1_i32 : i32 to vector<16x16xi32>
    %8 = arith.addi %6, %7 : vector<16x16xi32>
    %9 = arith.cmpi eq, %4, %8 : vector<16x16xi32>
    %10 = arith.extui %9 : vector<16x16xi1> to vector<16x16xi32>
    %11 = arith.sitofp %10 : vector<16x16xi32> to vector<16x16xf32>
    %12 = arith.truncf %11 : vector<16x16xf32> to vector<16x16xbf16>
    %cst = arith.constant dense<0.000000e+00> : vector<16x64xf32>
    %13 = tpu.matmul %12, %2, %cst {dimension_numbers = #tpu.dot_dimension_numbers<[1], [0], [0], [1], [0, 0, 1, 1], [], []>} : vector<16x16xbf16>, vector<16x64xbf16>, vector<16x64xf32> -> vector<16x64xf32>
    %14 = arith.truncf %13 : vector<16x64xf32> to vector<16x64xbf16>
    %c0_2 = arith.constant 0 : index
    %c0_3 = arith.constant 0 : index
    %c0_4 = arith.constant 0 : index
    %15 = vector.load %arg2[%c0_2, %c0_3, %c0_4] : memref<3x64x128xbf16, #tpu.memory_space<vmem>>, vector<1x64x128xbf16>
    %16 = vector.shape_cast %15 : vector<1x64x128xbf16> to vector<64x128xbf16>
    %cst_5 = arith.constant dense<0.000000e+00> : vector<16x128xf32>
    %17 = tpu.matmul %14, %16, %cst_5 {dimension_numbers = #tpu.dot_dimension_numbers<[1], [0], [0], [1], [0, 0, 1, 1], [], []>} : vector<16x64xbf16>, vector<64x128xbf16>, vector<16x128xf32> -> vector<16x128xf32>
    %c1_i32_6 = arith.constant 1 : i32
    %18 = vector.broadcast %c1_i32_6 : i32 to vector<16x16xi32>
    %19 = arith.muli %18, %3 : vector<16x16xi32>
    %c0_i32 = arith.constant 0 : i32
    %20 = vector.broadcast %c0_i32 : i32 to vector<16x16xi32>
    %21 = arith.addi %19, %20 : vector<16x16xi32>
    %22 = arith.cmpi eq, %4, %21 : vector<16x16xi32>
    %23 = arith.extui %22 : vector<16x16xi1> to vector<16x16xi32>
    %24 = arith.sitofp %23 : vector<16x16xi32> to vector<16x16xf32>
    %25 = arith.truncf %24 : vector<16x16xf32> to vector<16x16xbf16>
    %cst_7 = arith.constant dense<0.000000e+00> : vector<16x64xf32>
    %26 = tpu.matmul %25, %2, %cst_7 {dimension_numbers = #tpu.dot_dimension_numbers<[1], [0], [0], [1], [0, 0, 1, 1], [], []>} : vector<16x16xbf16>, vector<16x64xbf16>, vector<16x64xf32> -> vector<16x64xf32>
    %27 = arith.truncf %26 : vector<16x64xf32> to vector<16x64xbf16>
    %c1 = arith.constant 1 : index
    %c0_8 = arith.constant 0 : index
    %c0_9 = arith.constant 0 : index
    %28 = vector.load %arg2[%c1, %c0_8, %c0_9] : memref<3x64x128xbf16, #tpu.memory_space<vmem>>, vector<1x64x128xbf16>
    %29 = vector.shape_cast %28 : vector<1x64x128xbf16> to vector<64x128xbf16>
    %cst_10 = arith.constant dense<0.000000e+00> : vector<16x128xf32>
    %30 = tpu.matmul %27, %29, %cst_10 {dimension_numbers = #tpu.dot_dimension_numbers<[1], [0], [0], [1], [0, 0, 1, 1], [], []>} : vector<16x64xbf16>, vector<64x128xbf16>, vector<16x128xf32> -> vector<16x128xf32>
    %31 = arith.addf %17, %30 : vector<16x128xf32>
    %c1_i32_11 = arith.constant 1 : i32
    %32 = vector.broadcast %c1_i32_11 : i32 to vector<16x16xi32>
    %33 = arith.muli %32, %3 : vector<16x16xi32>
    %c1_i32_12 = arith.constant 1 : i32
    %34 = vector.broadcast %c1_i32_12 : i32 to vector<16x16xi32>
    %35 = arith.addi %33, %34 : vector<16x16xi32>
    %36 = arith.cmpi eq, %4, %35 : vector<16x16xi32>
    %37 = arith.extui %36 : vector<16x16xi1> to vector<16x16xi32>
    %38 = arith.sitofp %37 : vector<16x16xi32> to vector<16x16xf32>
    %39 = arith.truncf %38 : vector<16x16xf32> to vector<16x16xbf16>
    %cst_13 = arith.constant dense<0.000000e+00> : vector<16x64xf32>
    %40 = tpu.matmul %39, %2, %cst_13 {dimension_numbers = #tpu.dot_dimension_numbers<[1], [0], [0], [1], [0, 0, 1, 1], [], []>} : vector<16x16xbf16>, vector<16x64xbf16>, vector<16x64xf32> -> vector<16x64xf32>
    %41 = arith.truncf %40 : vector<16x64xf32> to vector<16x64xbf16>
    %c2 = arith.constant 2 : index
    %c0_14 = arith.constant 0 : index
    %c0_15 = arith.constant 0 : index
    %42 = vector.load %arg2[%c2, %c0_14, %c0_15] : memref<3x64x128xbf16, #tpu.memory_space<vmem>>, vector<1x64x128xbf16>
    %43 = vector.shape_cast %42 : vector<1x64x128xbf16> to vector<64x128xbf16>
    %cst_16 = arith.constant dense<0.000000e+00> : vector<16x128xf32>
    %44 = tpu.matmul %41, %43, %cst_16 {dimension_numbers = #tpu.dot_dimension_numbers<[1], [0], [0], [1], [0, 0, 1, 1], [], []>} : vector<16x64xbf16>, vector<64x128xbf16>, vector<16x128xf32> -> vector<16x128xf32>
    %45 = arith.addf %31, %44 : vector<16x128xf32>
    %c0_17 = arith.constant 0 : index
    %c0_18 = arith.constant 0 : index
    %46 = vector.load %arg3[%c0_17, %c0_18] : memref<1x128xf32, #tpu.memory_space<vmem>>, vector<1x128xf32>
    %47 = vector.broadcast %46 : vector<1x128xf32> to vector<16x128xf32>
    %48 = arith.mulf %45, %47 : vector<16x128xf32>
    %c0_19 = arith.constant 0 : index
    %c0_20 = arith.constant 0 : index
    %49 = vector.load %arg4[%c0_19, %c0_20] : memref<1x128xf32, #tpu.memory_space<vmem>>, vector<1x128xf32>
    %50 = vector.broadcast %49 : vector<1x128xf32> to vector<16x128xf32>
    %51 = arith.addf %48, %50 : vector<16x128xf32>
    %cst_21 = arith.constant 0.000000e+00 : f32
    %52 = vector.broadcast %cst_21 : f32 to vector<16x128xf32>
    %53 = arith.maximumf %51, %52 : vector<16x128xf32>
    %54 = arith.truncf %53 : vector<16x128xf32> to vector<16x128xbf16>
    %55 = tpu.iota {dimensions = array<i32: 0>} : vector<16x16xi32>
    %56 = tpu.iota {dimensions = array<i32: 1>} : vector<16x16xi32>
    %c1_i32_22 = arith.constant 1 : i32
    %57 = vector.broadcast %c1_i32_22 : i32 to vector<16x16xi32>
    %58 = arith.muli %57, %55 : vector<16x16xi32>
    %c-1_i32_23 = arith.constant -1 : i32
    %59 = vector.broadcast %c-1_i32_23 : i32 to vector<16x16xi32>
    %60 = arith.addi %58, %59 : vector<16x16xi32>
    %61 = arith.cmpi eq, %56, %60 : vector<16x16xi32>
    %62 = arith.extui %61 : vector<16x16xi1> to vector<16x16xi32>
    %63 = arith.sitofp %62 : vector<16x16xi32> to vector<16x16xf32>
    %64 = arith.truncf %63 : vector<16x16xf32> to vector<16x16xbf16>
    %cst_24 = arith.constant dense<0.000000e+00> : vector<16x128xf32>
    %65 = tpu.matmul %64, %54, %cst_24 {dimension_numbers = #tpu.dot_dimension_numbers<[1], [0], [0], [1], [0, 0, 1, 1], [], []>} : vector<16x16xbf16>, vector<16x128xbf16>, vector<16x128xf32> -> vector<16x128xf32>
    %66 = arith.truncf %65 : vector<16x128xf32> to vector<16x128xbf16>
    %c0_25 = arith.constant 0 : index
    %c0_26 = arith.constant 0 : index
    %c0_27 = arith.constant 0 : index
    %67 = vector.load %arg5[%c0_25, %c0_26, %c0_27] : memref<3x128x128xbf16, #tpu.memory_space<vmem>>, vector<1x128x128xbf16>
    %68 = vector.shape_cast %67 : vector<1x128x128xbf16> to vector<128x128xbf16>
    %cst_28 = arith.constant dense<0.000000e+00> : vector<16x128xf32>
    %69 = tpu.matmul %66, %68, %cst_28 {dimension_numbers = #tpu.dot_dimension_numbers<[1], [0], [0], [1], [0, 0, 1, 1], [], []>} : vector<16x128xbf16>, vector<128x128xbf16>, vector<16x128xf32> -> vector<16x128xf32>
    %c1_i32_29 = arith.constant 1 : i32
    %70 = vector.broadcast %c1_i32_29 : i32 to vector<16x16xi32>
    %71 = arith.muli %70, %55 : vector<16x16xi32>
    %c0_i32_30 = arith.constant 0 : i32
    %72 = vector.broadcast %c0_i32_30 : i32 to vector<16x16xi32>
    %73 = arith.addi %71, %72 : vector<16x16xi32>
    %74 = arith.cmpi eq, %56, %73 : vector<16x16xi32>
    %75 = arith.extui %74 : vector<16x16xi1> to vector<16x16xi32>
    %76 = arith.sitofp %75 : vector<16x16xi32> to vector<16x16xf32>
    %77 = arith.truncf %76 : vector<16x16xf32> to vector<16x16xbf16>
    %cst_31 = arith.constant dense<0.000000e+00> : vector<16x128xf32>
    %78 = tpu.matmul %77, %54, %cst_31 {dimension_numbers = #tpu.dot_dimension_numbers<[1], [0], [0], [1], [0, 0, 1, 1], [], []>} : vector<16x16xbf16>, vector<16x128xbf16>, vector<16x128xf32> -> vector<16x128xf32>
    %79 = arith.truncf %78 : vector<16x128xf32> to vector<16x128xbf16>
    %c1_32 = arith.constant 1 : index
    %c0_33 = arith.constant 0 : index
    %c0_34 = arith.constant 0 : index
    %80 = vector.load %arg5[%c1_32, %c0_33, %c0_34] : memref<3x128x128xbf16, #tpu.memory_space<vmem>>, vector<1x128x128xbf16>
    %81 = vector.shape_cast %80 : vector<1x128x128xbf16> to vector<128x128xbf16>
    %cst_35 = arith.constant dense<0.000000e+00> : vector<16x128xf32>
    %82 = tpu.matmul %79, %81, %cst_35 {dimension_numbers = #tpu.dot_dimension_numbers<[1], [0], [0], [1], [0, 0, 1, 1], [], []>} : vector<16x128xbf16>, vector<128x128xbf16>, vector<16x128xf32> -> vector<16x128xf32>
    %83 = arith.addf %69, %82 : vector<16x128xf32>
    %c1_i32_36 = arith.constant 1 : i32
    %84 = vector.broadcast %c1_i32_36 : i32 to vector<16x16xi32>
    %85 = arith.muli %84, %55 : vector<16x16xi32>
    %c1_i32_37 = arith.constant 1 : i32
    %86 = vector.broadcast %c1_i32_37 : i32 to vector<16x16xi32>
    %87 = arith.addi %85, %86 : vector<16x16xi32>
    %88 = arith.cmpi eq, %56, %87 : vector<16x16xi32>
    %89 = arith.extui %88 : vector<16x16xi1> to vector<16x16xi32>
    %90 = arith.sitofp %89 : vector<16x16xi32> to vector<16x16xf32>
    %91 = arith.truncf %90 : vector<16x16xf32> to vector<16x16xbf16>
    %cst_38 = arith.constant dense<0.000000e+00> : vector<16x128xf32>
    %92 = tpu.matmul %91, %54, %cst_38 {dimension_numbers = #tpu.dot_dimension_numbers<[1], [0], [0], [1], [0, 0, 1, 1], [], []>} : vector<16x16xbf16>, vector<16x128xbf16>, vector<16x128xf32> -> vector<16x128xf32>
    %93 = arith.truncf %92 : vector<16x128xf32> to vector<16x128xbf16>
    %c2_39 = arith.constant 2 : index
    %c0_40 = arith.constant 0 : index
    %c0_41 = arith.constant 0 : index
    %94 = vector.load %arg5[%c2_39, %c0_40, %c0_41] : memref<3x128x128xbf16, #tpu.memory_space<vmem>>, vector<1x128x128xbf16>
    %95 = vector.shape_cast %94 : vector<1x128x128xbf16> to vector<128x128xbf16>
    %cst_42 = arith.constant dense<0.000000e+00> : vector<16x128xf32>
    %96 = tpu.matmul %93, %95, %cst_42 {dimension_numbers = #tpu.dot_dimension_numbers<[1], [0], [0], [1], [0, 0, 1, 1], [], []>} : vector<16x128xbf16>, vector<128x128xbf16>, vector<16x128xf32> -> vector<16x128xf32>
    %97 = arith.addf %83, %96 : vector<16x128xf32>
    %c0_43 = arith.constant 0 : index
    %c0_44 = arith.constant 0 : index
    %98 = vector.load %arg6[%c0_43, %c0_44] : memref<1x128xf32, #tpu.memory_space<vmem>>, vector<1x128xf32>
    %99 = vector.broadcast %98 : vector<1x128xf32> to vector<16x128xf32>
    %100 = arith.mulf %97, %99 : vector<16x128xf32>
    %c0_45 = arith.constant 0 : index
    %c0_46 = arith.constant 0 : index
    %101 = vector.load %arg7[%c0_45, %c0_46] : memref<1x128xf32, #tpu.memory_space<vmem>>, vector<1x128xf32>
    %102 = vector.broadcast %101 : vector<1x128xf32> to vector<16x128xf32>
    %103 = arith.addf %100, %102 : vector<16x128xf32>
    %cst_47 = arith.constant 0.000000e+00 : f32
    %104 = vector.broadcast %cst_47 : f32 to vector<16x128xf32>
    %105 = arith.maximumf %103, %104 : vector<16x128xf32>
    %cst_48 = arith.constant dense<0.000000e+00> : vector<128xf32>
    %106 = vector.multi_reduction <add>, %105, %cst_48 [0] : vector<16x128xf32> to vector<128xf32>
    %107 = vector.shape_cast %106 : vector<128xf32> to vector<1x128xf32>
    %c0_49 = arith.constant 0 : index
    %c0_50 = arith.constant 0 : index
    %108 = vector.load %arg11[%c0_49, %c0_50] : memref<128x8xf32, #tpu.memory_space<vmem>>, vector<128x8xf32>
    %cst_51 = arith.constant dense<0.000000e+00> : vector<1x8xf32>
    %109 = tpu.matmul %107, %108, %cst_51 {dimension_numbers = #tpu.dot_dimension_numbers<[1], [0], [0], [1], [0, 0, 1, 1], [], []>} : vector<1x128xf32>, vector<128x8xf32>, vector<1x8xf32> -> vector<1x8xf32>
    %c0_52 = arith.constant 0 : index
    %c0_53 = arith.constant 0 : index
    %110 = vector.load %arg12[%c0_52, %c0_53] : memref<1x8xf32, #tpu.memory_space<vmem>>, vector<1x8xf32>
    %111 = arith.addf %109, %110 : vector<1x8xf32>
    %112 = arith.negf %111 : vector<1x8xf32>
    %113 = math.exp %112 : vector<1x8xf32>
    %cst_54 = arith.constant 1.000000e+00 : f32
    %114 = vector.broadcast %cst_54 : f32 to vector<1x8xf32>
    %115 = arith.addf %114, %113 : vector<1x8xf32>
    %116 = arith.divf %114, %115 : vector<1x8xf32>
    %c0_55 = arith.constant 0 : index
    %c0_56 = arith.constant 0 : index
    %117 = vector.load %arg13[%c0_55, %c0_56] : memref<8x128xf32, #tpu.memory_space<vmem>>, vector<8x128xf32>
    %cst_57 = arith.constant dense<0.000000e+00> : vector<1x128xf32>
    %118 = tpu.matmul %116, %117, %cst_57 {dimension_numbers = #tpu.dot_dimension_numbers<[1], [0], [0], [1], [0, 0, 1, 1], [], []>} : vector<1x8xf32>, vector<8x128xf32>, vector<1x128xf32> -> vector<1x128xf32>
    %119 = vector.broadcast %118 : vector<1x128xf32> to vector<16x128xf32>
    %120 = arith.mulf %105, %119 : vector<16x128xf32>
    %c0_58 = arith.constant 0 : index
    %c0_59 = arith.constant 0 : index
    %c0_60 = arith.constant 0 : index
    %121 = vector.load %arg14[%c0_58, %c0_59, %c0_60] : memref<1x16x128xf32, #tpu.memory_space<vmem>>, vector<1x16x128xf32>
    %122 = vector.shape_cast %121 : vector<1x16x128xf32> to vector<16x128xf32>
    %123 = vector.shape_cast %120 : vector<16x128xf32> to vector<1x16x128xf32>
    tpu.vector_store %arg14[%c0_58, %c0_59, %c0_60], %123 {strides = array<i32>} : memref<1x16x128xf32, #tpu.memory_space<vmem>>, vector<1x16x128xf32>,
    %124 = arith.truncf %120 : vector<16x128xf32> to vector<16x128xbf16>
    %125 = tpu.iota {dimensions = array<i32: 0>} : vector<8x16xi32>
    %126 = tpu.iota {dimensions = array<i32: 1>} : vector<8x16xi32>
    %c2_i32 = arith.constant 2 : i32
    %127 = vector.broadcast %c2_i32 : i32 to vector<8x16xi32>
    %128 = arith.muli %127, %125 : vector<8x16xi32>
    %c-1_i32_61 = arith.constant -1 : i32
    %129 = vector.broadcast %c-1_i32_61 : i32 to vector<8x16xi32>
    %130 = arith.addi %128, %129 : vector<8x16xi32>
    %131 = arith.cmpi eq, %126, %130 : vector<8x16xi32>
    %132 = arith.extui %131 : vector<8x16xi1> to vector<8x16xi32>
    %133 = arith.sitofp %132 : vector<8x16xi32> to vector<8x16xf32>
    %134 = arith.truncf %133 : vector<8x16xf32> to vector<8x16xbf16>
    %cst_62 = arith.constant dense<0.000000e+00> : vector<8x128xf32>
    %135 = tpu.matmul %134, %124, %cst_62 {dimension_numbers = #tpu.dot_dimension_numbers<[1], [0], [0], [1], [0, 0, 1, 1], [], []>} : vector<8x16xbf16>, vector<16x128xbf16>, vector<8x128xf32> -> vector<8x128xf32>
    %136 = arith.truncf %135 : vector<8x128xf32> to vector<8x128xbf16>
    %c0_63 = arith.constant 0 : index
    %c0_64 = arith.constant 0 : index
    %c0_65 = arith.constant 0 : index
    %137 = vector.load %arg8[%c0_63, %c0_64, %c0_65] : memref<3x128x64xbf16, #tpu.memory_space<vmem>>, vector<1x128x64xbf16>
    %138 = vector.shape_cast %137 : vector<1x128x64xbf16> to vector<128x64xbf16>
    %cst_66 = arith.constant dense<0.000000e+00> : vector<8x64xf32>
    %139 = tpu.matmul %136, %138, %cst_66 {dimension_numbers = #tpu.dot_dimension_numbers<[1], [0], [0], [1], [0, 0, 1, 1], [], []>} : vector<8x128xbf16>, vector<128x64xbf16>, vector<8x64xf32> -> vector<8x64xf32>
    %c2_i32_67 = arith.constant 2 : i32
    %140 = vector.broadcast %c2_i32_67 : i32 to vector<8x16xi32>
    %141 = arith.muli %140, %125 : vector<8x16xi32>
    %c0_i32_68 = arith.constant 0 : i32
    %142 = vector.broadcast %c0_i32_68 : i32 to vector<8x16xi32>
    %143 = arith.addi %141, %142 : vector<8x16xi32>
    %144 = arith.cmpi eq, %126, %143 : vector<8x16xi32>
    %145 = arith.extui %144 : vector<8x16xi1> to vector<8x16xi32>
    %146 = arith.sitofp %145 : vector<8x16xi32> to vector<8x16xf32>
    %147 = arith.truncf %146 : vector<8x16xf32> to vector<8x16xbf16>
    %cst_69 = arith.constant dense<0.000000e+00> : vector<8x128xf32>
    %148 = tpu.matmul %147, %124, %cst_69 {dimension_numbers = #tpu.dot_dimension_numbers<[1], [0], [0], [1], [0, 0, 1, 1], [], []>} : vector<8x16xbf16>, vector<16x128xbf16>, vector<8x128xf32> -> vector<8x128xf32>
    %149 = arith.truncf %148 : vector<8x128xf32> to vector<8x128xbf16>
    %c1_70 = arith.constant 1 : index
    %c0_71 = arith.constant 0 : index
    %c0_72 = arith.constant 0 : index
    %150 = vector.load %arg8[%c1_70, %c0_71, %c0_72] : memref<3x128x64xbf16, #tpu.memory_space<vmem>>, vector<1x128x64xbf16>
    %151 = vector.shape_cast %150 : vector<1x128x64xbf16> to vector<128x64xbf16>
    %cst_73 = arith.constant dense<0.000000e+00> : vector<8x64xf32>
    %152 = tpu.matmul %149, %151, %cst_73 {dimension_numbers = #tpu.dot_dimension_numbers<[1], [0], [0], [1], [0, 0, 1, 1], [], []>} : vector<8x128xbf16>, vector<128x64xbf16>, vector<8x64xf32> -> vector<8x64xf32>
    %153 = arith.addf %139, %152 : vector<8x64xf32>
    %c2_i32_74 = arith.constant 2 : i32
    %154 = vector.broadcast %c2_i32_74 : i32 to vector<8x16xi32>
    %155 = arith.muli %154, %125 : vector<8x16xi32>
    %c1_i32_75 = arith.constant 1 : i32
    %156 = vector.broadcast %c1_i32_75 : i32 to vector<8x16xi32>
    %157 = arith.addi %155, %156 : vector<8x16xi32>
    %158 = arith.cmpi eq, %126, %157 : vector<8x16xi32>
    %159 = arith.extui %158 : vector<8x16xi1> to vector<8x16xi32>
    %160 = arith.sitofp %159 : vector<8x16xi32> to vector<8x16xf32>
    %161 = arith.truncf %160 : vector<8x16xf32> to vector<8x16xbf16>
    %cst_76 = arith.constant dense<0.000000e+00> : vector<8x128xf32>
    %162 = tpu.matmul %161, %124, %cst_76 {dimension_numbers = #tpu.dot_dimension_numbers<[1], [0], [0], [1], [0, 0, 1, 1], [], []>} : vector<8x16xbf16>, vector<16x128xbf16>, vector<8x128xf32> -> vector<8x128xf32>
    %163 = arith.truncf %162 : vector<8x128xf32> to vector<8x128xbf16>
    %c2_77 = arith.constant 2 : index
    %c0_78 = arith.constant 0 : index
    %c0_79 = arith.constant 0 : index
    %164 = vector.load %arg8[%c2_77, %c0_78, %c0_79] : memref<3x128x64xbf16, #tpu.memory_space<vmem>>, vector<1x128x64xbf16>
    %165 = vector.shape_cast %164 : vector<1x128x64xbf16> to vector<128x64xbf16>
    %cst_80 = arith.constant dense<0.000000e+00> : vector<8x64xf32>
    %166 = tpu.matmul %163, %165, %cst_80 {dimension_numbers = #tpu.dot_dimension_numbers<[1], [0], [0], [1], [0, 0, 1, 1], [], []>} : vector<8x128xbf16>, vector<128x64xbf16>, vector<8x64xf32> -> vector<8x64xf32>
    %167 = arith.addf %153, %166 : vector<8x64xf32>
    %c0_81 = arith.constant 0 : index
    %c0_82 = arith.constant 0 : index
    %168 = vector.load %arg9[%c0_81, %c0_82] : memref<1x64xf32, #tpu.memory_space<vmem>>, vector<1x64xf32>
    %169 = vector.broadcast %168 : vector<1x64xf32> to vector<8x64xf32>
    %170 = arith.mulf %167, %169 : vector<8x64xf32>
    %c0_83 = arith.constant 0 : index
    %c0_84 = arith.constant 0 : index
    %171 = vector.load %arg10[%c0_83, %c0_84] : memref<1x64xf32, #tpu.memory_space<vmem>>, vector<1x64xf32>
    %172 = vector.broadcast %171 : vector<1x64xf32> to vector<8x64xf32>
    %173 = arith.addf %170, %172 : vector<8x64xf32>
    %cst_85 = arith.constant 0.000000e+00 : f32
    %174 = vector.broadcast %cst_85 : f32 to vector<8x64xf32>
    %175 = arith.maximumf %173, %174 : vector<8x64xf32>
    %c0_86 = arith.constant 0 : index
    %c0_87 = arith.constant 0 : index
    %c0_88 = arith.constant 0 : index
    %176 = vector.load %arg15[%c0_86, %c0_87, %c0_88] : memref<1x8x64xf32, #tpu.memory_space<vmem>>, vector<1x8x64xf32>
    %177 = vector.shape_cast %176 : vector<1x8x64xf32> to vector<8x64xf32>
    %178 = vector.shape_cast %175 : vector<8x64xf32> to vector<1x8x64xf32>
    tpu.vector_store %arg15[%c0_86, %c0_87, %c0_88], %178 {strides = array<i32>} : memref<1x8x64xf32, #tpu.memory_space<vmem>>, vector<1x8x64xf32>,
    return
  }
  func.func @transform_0(%arg0: i32) -> (i32, i32, i32) {
    %c0_i32 = arith.constant 0 : i32
    %c0_i32_0 = arith.constant 0 : i32
    %c0_i32_1 = arith.constant 0 : i32
    return %arg0, %c0_i32, %c0_i32_0 : i32, i32, i32
  }
  func.func @transform_1(%arg0: i32) -> (i32, i32, i32) {
    %c0_i32 = arith.constant 0 : i32
    %c0_i32_0 = arith.constant 0 : i32
    %c0_i32_1 = arith.constant 0 : i32
    %c0_i32_2 = arith.constant 0 : i32
    return %c0_i32, %c0_i32_0, %c0_i32_1 : i32, i32, i32
  }
  func.func @transform_2(%arg0: i32) -> (i32, i32) {
    %c0_i32 = arith.constant 0 : i32
    %c0_i32_0 = arith.constant 0 : i32
    %c0_i32_1 = arith.constant 0 : i32
    return %c0_i32, %c0_i32_0 : i32, i32
  }
  func.func @transform_3(%arg0: i32) -> (i32, i32) {
    %c0_i32 = arith.constant 0 : i32
    %c0_i32_0 = arith.constant 0 : i32
    %c0_i32_1 = arith.constant 0 : i32
    return %c0_i32, %c0_i32_0 : i32, i32
  }
  func.func @transform_4(%arg0: i32) -> (i32, i32, i32) {
    %c0_i32 = arith.constant 0 : i32
    %c0_i32_0 = arith.constant 0 : i32
    %c0_i32_1 = arith.constant 0 : i32
    %c0_i32_2 = arith.constant 0 : i32
    return %c0_i32, %c0_i32_0, %c0_i32_1 : i32, i32, i32
  }
  func.func @transform_5(%arg0: i32) -> (i32, i32) {
    %c0_i32 = arith.constant 0 : i32
    %c0_i32_0 = arith.constant 0 : i32
    %c0_i32_1 = arith.constant 0 : i32
    return %c0_i32, %c0_i32_0 : i32, i32
  }
  func.func @transform_6(%arg0: i32) -> (i32, i32) {
    %c0_i32 = arith.constant 0 : i32
    %c0_i32_0 = arith.constant 0 : i32
    %c0_i32_1 = arith.constant 0 : i32
    return %c0_i32, %c0_i32_0 : i32, i32
  }
  func.func @transform_7(%arg0: i32) -> (i32, i32, i32) {
    %c0_i32 = arith.constant 0 : i32
    %c0_i32_0 = arith.constant 0 : i32
    %c0_i32_1 = arith.constant 0 : i32
    %c0_i32_2 = arith.constant 0 : i32
    return %c0_i32, %c0_i32_0, %c0_i32_1 : i32, i32, i32
  }
  func.func @transform_8(%arg0: i32) -> (i32, i32) {
    %c0_i32 = arith.constant 0 : i32
    %c0_i32_0 = arith.constant 0 : i32
    %c0_i32_1 = arith.constant 0 : i32
    return %c0_i32, %c0_i32_0 : i32, i32
  }
  func.func @transform_9(%arg0: i32) -> (i32, i32) {
    %c0_i32 = arith.constant 0 : i32
    %c0_i32_0 = arith.constant 0 : i32
    %c0_i32_1 = arith.constant 0 : i32
    return %c0_i32, %c0_i32_0 : i32, i32
  }
  func.func @transform_10(%arg0: i32) -> (i32, i32) {
    %c0_i32 = arith.constant 0 : i32
    %c0_i32_0 = arith.constant 0 : i32
    %c0_i32_1 = arith.constant 0 : i32
    return %c0_i32, %c0_i32_0 : i32, i32
  }
  func.func @transform_11(%arg0: i32) -> (i32, i32) {
    %c0_i32 = arith.constant 0 : i32
    %c0_i32_0 = arith.constant 0 : i32
    %c0_i32_1 = arith.constant 0 : i32
    return %c0_i32, %c0_i32_0 : i32, i32
  }
  func.func @transform_12(%arg0: i32) -> (i32, i32) {
    %c0_i32 = arith.constant 0 : i32
    %c0_i32_0 = arith.constant 0 : i32
    %c0_i32_1 = arith.constant 0 : i32
    return %c0_i32, %c0_i32_0 : i32, i32
  }
  func.func @transform_13(%arg0: i32) -> (i32, i32, i32) {
    %c0_i32 = arith.constant 0 : i32
    %c0_i32_0 = arith.constant 0 : i32
    %c0_i32_1 = arith.constant 0 : i32
    return %arg0, %c0_i32, %c0_i32_0 : i32, i32, i32
  }
  func.func @transform_14(%arg0: i32) -> (i32, i32, i32) {
    %c0_i32 = arith.constant 0 : i32
    %c0_i32_0 = arith.constant 0 : i32
    %c0_i32_1 = arith.constant 0 : i32
    return %arg0, %c0_i32, %c0_i32_0 : i32, i32, i32
  }
}

</mosaic_0001>

<bundles_post_ra>
// kernel: tile.43
= control target key start
LH: loop header
LB: loop body
LE: loop exit
PB: predicated region body
PF: predicated region fallthrough
CT: control target
= control target key end

     0   :  { %s28_s0 = inlined_call_operand.vmem [shape: f32[8], index: 0, kind: input, shape index: {}]   ;;  %s29_s1 = inlined_call_operand.vmem [shape: f32[16,8], index: 1, kind: output, shape index: {}]  }
   0x1   :  { %v4_v0 = vld [vmem:[%s28_s0] ss:$0 sm:$0xff] }
   0x2   :  { %5 = vst [vmem:[%s29_s1] sm:$0xff] %v4_v0  ;;  %8 = vst [vmem:[%s29_s1 + $0x8] sm:$0xff] %v4_v0 }

// kernel: tile.44
= control target key start
LH: loop header
LB: loop body
LE: loop exit
PB: predicated region body
PF: predicated region fallthrough
CT: control target
= control target key end

     0   :  { %s131_s10 = smov 120   ;;  %s132_s11 = smov 104   ;;  %vm3_vm0 = vcmask 64512   ;;  %vm9_vm1 = vcmask 1048512   ;;  %vm15_vm2 = vcmask 982912   ;;  %vm21_vm3 = vcmask 917312   ;;  %s207_s0 = inlined_call_operand.vmem [shape: f32[16,8], index: 0, kind: input, shape index: {}]   ;;  %s208_s1 = inlined_call_operand.vmem [shape: f32[1,128], index: 1, kind: output, shape index: {}]  }
   0x1   :  { %v101_v0 = vld [vmem:[%s207_s0 + $0xf] sm:$0x1]   ;;  %v103_v1 = vld [vmem:[%s207_s0 + $0xd] sm:$0x1]   ;;  %v102_v2 = vld [vmem:[%s207_s0 + $0xe] sm:$0x1]  }
   0x2   :  { %7 = vrot.lane.b32.xlu0 %v101_v0, %s131_s10  ;;  %19 = vrot.lane.b32.xlu1 %v103_v1, %s132_s11  ;;  %v104_v3 = vld [vmem:[%s207_s0 + $0xc] sm:$0x1]   ;;  %s133_s16 = smov 112   ;;  %s134_s17 = smov 96   ;;  %v105_v4 = vld [vmem:[%s207_s0 + $0xb] sm:$0x1]  }
   0x3   :  { %v106_v5 = vld [vmem:[%s207_s0 + $0xa] sm:$0x1]   ;;  %v2_v6 = vld [vmem:[%s207_s0] sm:$0x1]   ;;  %s135_s24 = smov 88   ;;  %s136_s25 = smov 80  }
   0x4   :  { %4 = vst.msk [vmem:[#allocation0] sm:$0x1] %vm3_vm0, %v2_v6   ;;  %v107_v7 = vld [vmem:[%s207_s0 + $0x9] sm:$0x1]   ;;  %v108_v8 = vld [vmem:[%s207_s0 + $0x8] sm:$0x1]  }
   0x5   :  { %s137_s30 = smov 72   ;;  %s138_s2 = smov 64   ;;  %v109_v9 = vld [vmem:[%s207_s0 + $0x7] sm:$0x1]   ;;  %v110_v10 = vld [vmem:[%s207_s0 + $0x6] sm:$0x1]  }
   0x6   :  { %13 = vrot.lane.b32.xlu0 %v102_v2, %s133_s16  ;;  %25 = vrot.lane.b32.xlu1 %v104_v3, %s134_s17  ;;  %s139_s7 = smov 56   ;;  %s140_s8 = smov 48   ;;  %v111_v11 = vld [vmem:[%s207_s0 + $0x5] sm:$0x1]   ;;  %v112_v12 = vld [vmem:[%s207_s0 + $0x4] sm:$0x1]  }
   0x7   :  { %s141_s13 = smov 40   ;;  %s142_s14 = smov 32   ;;  %v113_v13 = vld [vmem:[%s207_s0 + $0x3] sm:$0x1]   ;;  %v114_v14 = vld [vmem:[%s207_s0 + $0x2] sm:$0x1]  }
   0x8   :  { %s143_s19 = smov 24   ;;  %s144_s20 = smov 16   ;;  %v115_v15 = vld [vmem:[%s207_s0 + $0x1] sm:$0x1]   ;;  %vm27_vm4 = vcmask 851712   ;;  %vm33_vm5 = vcmask 786112  }
   0x9   :  { %s145_s0 = smov 8   ;;  %vm39_vm6 = vcmask 720512   ;;  %vm45_vm7 = vcmask 654912   ;;  %vm51_vm8 = vcmask 589312   ;;  %vm57_vm9 = vcmask 523712  }
   0xa   :  { %31 = vrot.lane.b32.xlu0 %v105_v4, %s135_s24  ;;  %37 = vrot.lane.b32.xlu1 %v106_v5, %s136_s25  ;;  %vm63_vm10 = vcmask 458112   ;;  %vm69_vm11 = vcmask 392512   ;;  %vm75_vm12 = vcmask 326912   ;;  %vm81_vm13 = vcmask 261312  }
   0xb   :  { %vm87_vm14 = vcmask 195712   ;;  %vm93_vm15 = vcmask 130112  }
   0xe   :  { %43 = vrot.lane.b32.xlu0 %v107_v7, %s137_s30  ;;  %49 = vrot.lane.b32.xlu1 %v108_v8, %s138_s2 }
  0x12   :  { %55 = vrot.lane.b32.xlu0 %v109_v9, %s139_s7  ;;  %61 = vrot.lane.b32.xlu1 %v110_v10, %s140_s8 }
  0x16   :  { %67 = vrot.lane.b32.xlu0 %v111_v11, %s141_s13  ;;  %73 = vrot.lane.b32.xlu1 %v112_v12, %s142_s14 }
  0x1a   :  { %79 = vrot.lane.b32.xlu0 %v113_v13, %s143_s19  ;;  %85 = vrot.lane.b32.xlu1 %v114_v14, %s144_s20 }
  0x1e   :  { %91 = vrot.lane.b32.xlu0 %v115_v15, %s145_s0 }
  0x74   :  { %v8_v16 = vpop.permute.xlu0 %7   ;;  %v20_v17 = vpop.permute.xlu1 %19  }
  0x75   :  { %10 = vst.msk [vmem:[#allocation0] sm:$0x1] %vm9_vm1, %v8_v16  }
  0x78   :  { %v14_v18 = vpop.permute.xlu0 %13   ;;  %v26_v19 = vpop.permute.xlu1 %25  }
  0x79   :  { %16 = vst.msk [vmem:[#allocation0] sm:$0x1] %vm15_vm2, %v14_v18  }
  0x7a   :  { %22 = vst.msk [vmem:[#allocation0] sm:$0x1] %vm21_vm3, %v20_v17  }
  0x7b   :  { %28 = vst.msk [vmem:[#allocation0] sm:$0x1] %vm27_vm4, %v26_v19  }
  0x7c   :  { %v32_v20 = vpop.permute.xlu0 %31   ;;  %v38_v21 = vpop.permute.xlu1 %37  }
  0x7d   :  { %34 = vst.msk [vmem:[#allocation0] sm:$0x1] %vm33_vm5, %v32_v20  }
  0x7e   :  { %40 = vst.msk [vmem:[#allocation0] sm:$0x1] %vm39_vm6, %v38_v21  }
  0x80   :  { %v44_v22 = vpop.permute.xlu0 %43   ;;  %v50_v23 = vpop.permute.xlu1 %49  }
  0x81   :  { %46 = vst.msk [vmem:[#allocation0] sm:$0x1] %vm45_vm7, %v44_v22  }
  0x82   :  { %52 = vst.msk [vmem:[#allocation0] sm:$0x1] %vm51_vm8, %v50_v23  }
  0x84   :  { %v56_v24 = vpop.permute.xlu0 %55   ;;  %v62_v25 = vpop.permute.xlu1 %61  }
  0x85   :  { %58 = vst.msk [vmem:[#allocation0] sm:$0x1] %vm57_vm9, %v56_v24  }
  0x86   :  { %64 = vst.msk [vmem:[#allocation0] sm:$0x1] %vm63_vm10, %v62_v25  }
  0x88   :  { %v68_v26 = vpop.permute.xlu0 %67   ;;  %v74_v27 = vpop.permute.xlu1 %73  }
  0x89   :  { %70 = vst.msk [vmem:[#allocation0] sm:$0x1] %vm69_vm11, %v68_v26  }
  0x8a   :  { %76 = vst.msk [vmem:[#allocation0] sm:$0x1] %vm75_vm12, %v74_v27  }
  0x8c   :  { %v80_v28 = vpop.permute.xlu0 %79   ;;  %v86_v29 = vpop.permute.xlu1 %85  }
  0x8d   :  { %82 = vst.msk [vmem:[#allocation0] sm:$0x1] %vm81_vm13, %v80_v28  }
  0x8e   :  { %88 = vst.msk [vmem:[#allocation0] sm:$0x1] %vm87_vm14, %v86_v29  }
  0x90   :  { %v92_v30 = vpop.permute.xlu0 %91  }
  0x91   :  { %94 = vst.msk [vmem:[#allocation0] sm:$0x1] %vm93_vm15, %v92_v30  }
  0x98   :  { %v98_v31 = vld [vmem:[#allocation0] sm:$0x1] }
  0x99   :  { %100 = vst [vmem:[%s208_s1] sm:$0x1] %v98_v31 }

// kernel: tile.63
= control target key start
LH: loop header
LB: loop body
LE: loop exit
PB: predicated region body
PF: predicated region fallthrough
CT: control target
= control target key end

     0   :  { %s22_s0 = inlined_call_operand.vmem [shape: f32[8], index: 0, kind: input, shape index: {}]   ;;  %s23_s1 = inlined_call_operand.vmem [shape: f32[8,8], index: 1, kind: output, shape index: {}]  }
   0x1   :  { %v4_v0 = vld [vmem:[%s22_s0] ss:$0 sm:$0xff] }
   0x2   :  { %5 = vst [vmem:[%s23_s1] sm:$0xff] %v4_v0 }

// kernel: tile.64
= control target key start
LH: loop header
LB: loop body
LE: loop exit
PB: predicated region body
PF: predicated region fallthrough
CT: control target
= control target key end

     0   :  { %s67_s10 = smov 56   ;;  %s68_s11 = smov 40   ;;  %vm3_vm0 = vcmask 64512   ;;  %vm9_vm1 = vcmask 523712   ;;  %vm15_vm2 = vcmask 458112   ;;  %vm21_vm3 = vcmask 392512   ;;  %s111_s0 = inlined_call_operand.vmem [shape: f32[8,8], index: 0, kind: input, shape index: {}]   ;;  %s112_s1 = inlined_call_operand.vmem [shape: f32[1,64], index: 1, kind: output, shape index: {}]  }
   0x1   :  { %v53_v0 = vld [vmem:[%s111_s0 + $0x7] sm:$0x1]   ;;  %v55_v1 = vld [vmem:[%s111_s0 + $0x5] sm:$0x1]   ;;  %v54_v2 = vld [vmem:[%s111_s0 + $0x6] sm:$0x1]  }
   0x2   :  { %7 = vrot.lane.b32.xlu0 %v53_v0, %s67_s10  ;;  %19 = vrot.lane.b32.xlu1 %v55_v1, %s68_s11  ;;  %v56_v3 = vld [vmem:[%s111_s0 + $0x4] sm:$0x1]   ;;  %v2_v4 = vld [vmem:[%s111_s0] sm:$0x1]   ;;  %s69_s18 = smov 48   ;;  %s70_s19 = smov 32  }
   0x3   :  { %4 = vst.msk [vmem:[#allocation0] sm:$0x1] %vm3_vm0, %v2_v4   ;;  %v57_v5 = vld [vmem:[%s111_s0 + $0x3] sm:$0x1]   ;;  %v58_v6 = vld [vmem:[%s111_s0 + $0x2] sm:$0x1]  }
   0x4   :  { %s71_s24 = smov 24   ;;  %s72_s25 = smov 16   ;;  %v59_v7 = vld [vmem:[%s111_s0 + $0x1] sm:$0x1]   ;;  %vm27_vm4 = vcmask 326912   ;;  %vm33_vm5 = vcmask 261312  }
   0x5   :  { %s73_s0 = smov 8   ;;  %vm39_vm6 = vcmask 195712   ;;  %vm45_vm7 = vcmask 130112  }
   0x6   :  { %13 = vrot.lane.b32.xlu0 %v54_v2, %s69_s18  ;;  %25 = vrot.lane.b32.xlu1 %v56_v3, %s70_s19 }
   0xa   :  { %31 = vrot.lane.b32.xlu0 %v57_v5, %s71_s24  ;;  %37 = vrot.lane.b32.xlu1 %v58_v6, %s72_s25 }
   0xe   :  { %43 = vrot.lane.b32.xlu0 %v59_v7, %s73_s0 }
  0x74   :  { %v8_v8 = vpop.permute.xlu0 %7   ;;  %v20_v9 = vpop.permute.xlu1 %19  }
  0x75   :  { %10 = vst.msk [vmem:[#allocation0] sm:$0x1] %vm9_vm1, %v8_v8  }
  0x78   :  { %v14_v10 = vpop.permute.xlu0 %13   ;;  %v26_v11 = vpop.permute.xlu1 %25  }
  0x79   :  { %16 = vst.msk [vmem:[#allocation0] sm:$0x1] %vm15_vm2, %v14_v10  }
  0x7a   :  { %22 = vst.msk [vmem:[#allocation0] sm:$0x1] %vm21_vm3, %v20_v9  }
  0x7b   :  { %28 = vst.msk [vmem:[#allocation0] sm:$0x1] %vm27_vm4, %v26_v11  }
  0x7c   :  { %v32_v12 = vpop.permute.xlu0 %31   ;;  %v38_v13 = vpop.permute.xlu1 %37  }
  0x7d   :  { %34 = vst.msk [vmem:[#allocation0] sm:$0x1] %vm33_vm5, %v32_v12  }
  0x7e   :  { %40 = vst.msk [vmem:[#allocation0] sm:$0x1] %vm39_vm6, %v38_v13  }
  0x80   :  { %v44_v14 = vpop.permute.xlu0 %43  }
  0x81   :  { %46 = vst.msk [vmem:[#allocation0] sm:$0x1] %vm45_vm7, %v44_v14  }
  0x88   :  { %v50_v15 = vld [vmem:[#allocation0] sm:$0x1] }
  0x89   :  { %52 = vst [vmem:[%s112_s1] sm:$0x1] %v50_v15 }

// kernel: tile.79
= control target key start
LH: loop header
LB: loop body
LE: loop exit
PB: predicated region body
PF: predicated region fallthrough
CT: control target
= control target key end

     0   :  { %vm6_vm0 = vcmask 1043458   ;;  %vm10_vm1 = vcmask 1045508   ;;  %vm14_vm2 = vcmask 1047558   ;;  %s19_s6 = smov 3  ;;  %s22_s7 = smov 12  ;;  %vm16_vm3 = vcmask 64512   ;;  %s736_s0 = inlined_call_operand.vmem [shape: f32[8,16,8], index: 0, kind: input, shape index: {}]   ;;  %s737_s1 = inlined_call_operand.vmem [shape: f32[8,128], index: 1, kind: output, shape index: {}]  }
   0x1   :  { %v348_v0 = vld [vmem:[%s736_s0 + $0xf] ss:$16 sm:%s19_s6]   ;;  %s27_s12 = smov 48  ;;  %s32_s13 = smov 192  ;;  %vm38_vm4 = vcmask 1048512   ;;  %vm60_vm5 = vcmask 982912  }
   0x2   :  { %v349_v1 = vld [vmem:[%s736_s0 + $0xf] ss:$16 sm:%s22_s7]   ;;  %s63_s18 = smov 3  ;;  %s66_s21 = smov 12  ;;  %vm82_vm6 = vcmask 917312   ;;  %vm104_vm7 = vcmask 851712  }
   0x3   :  { %v25_v2 = vsel %vm6_vm0, %v349_v1, %v348_v0  ;;  %v350_v3 = vld [vmem:[%s736_s0 + $0xf] ss:$16 sm:%s27_s12]   ;;  %v356_v6 = vld [vmem:[%s736_s0 + $0xd] ss:$16 sm:%s63_s18]   ;;  %s71_s22 = smov 48  ;;  %s76_s27 = smov 192 }
   0x4   :  { %v351_v4 = vld [vmem:[%s736_s0 + $0xf] ss:$16 sm:%s32_s13]   ;;  %v30_v5 = vsel %vm10_vm1, %v350_v3, %v25_v2  ;;  %v357_v8 = vld [vmem:[%s736_s0 + $0xd] ss:$16 sm:%s66_s21]   ;;  %s423_s28 = smov 120   ;;  %s41_s2 = smov 3 }
   0x5   :  { %v35_v7 = vsel %vm14_vm2, %v351_v4, %v30_v5  ;;  %v358_v9 = vld [vmem:[%s736_s0 + $0xd] ss:$16 sm:%s71_s22]   ;;  %v69_v10 = vsel %vm6_vm0, %v357_v8, %v356_v6  ;;  %s44_s3 = smov 12  ;;  %v352_v13 = vld [vmem:[%s736_s0 + $0xe] ss:$16 sm:%s41_s2]   ;;  %s49_s8 = smov 48 }
   0x6   :  { %36 = vrot.lane.b32.xlu0 %v35_v7, %s423_s28  ;;  %v359_v11 = vld [vmem:[%s736_s0 + $0xd] ss:$16 sm:%s76_s27]   ;;  %v74_v12 = vsel %vm10_vm1, %v358_v9, %v69_v10  ;;  %s54_s9 = smov 192  ;;  %s85_s14 = smov 3  ;;  %vm126_vm8 = vcmask 786112   ;;  %vm148_vm9 = vcmask 720512  }
   0x7   :  { %v353_v14 = vld [vmem:[%s736_s0 + $0xe] ss:$16 sm:%s44_s3]   ;;  %v79_v15 = vsel %vm14_vm2, %v359_v11, %v74_v12  ;;  %s424_s15 = smov 104   ;;  %v360_v20 = vld [vmem:[%s736_s0 + $0xc] ss:$16 sm:%s85_s14]   ;;  %s88_s18 = smov 12 }
   0x8   :  { %v47_v16 = vsel %vm6_vm0, %v353_v14, %v352_v13  ;;  %v354_v17 = vld [vmem:[%s736_s0 + $0xe] ss:$16 sm:%s49_s8]   ;;  %80 = vrot.lane.b32.xlu1 %v79_v15, %s424_s15  ;;  %s93_s19 = smov 48  ;;  %s98_s24 = smov 192  ;;  %vm170_vm10 = vcmask 654912   ;;  %vm192_vm11 = vcmask 589312  }
   0x9   :  { %v355_v18 = vld [vmem:[%s736_s0 + $0xe] ss:$16 sm:%s54_s9]   ;;  %v52_v19 = vsel %vm10_vm1, %v354_v17, %v47_v16  ;;  %v361_v22 = vld [vmem:[%s736_s0 + $0xc] ss:$16 sm:%s88_s18]   ;;  %s425_s25 = smov 112   ;;  %s107_s28 = smov 3 }
   0xa   :  { %v57_v21 = vsel %vm14_vm2, %v355_v18, %v52_v19  ;;  %v362_v23 = vld [vmem:[%s736_s0 + $0xc] ss:$16 sm:%s93_s19]   ;;  %v91_v24 = vsel %vm6_vm0, %v361_v22, %v360_v20  ;;  %s110_s29 = smov 12  ;;  %v364_v27 = vld [vmem:[%s736_s0 + $0xb] ss:$16 sm:%s107_s28]   ;;  %s115_s5 = smov 48 }
   0xb   :  { %58 = vrot.lane.b32.xlu0 %v57_v21, %s425_s25  ;;  %v363_v25 = vld [vmem:[%s736_s0 + $0xc] ss:$16 sm:%s98_s24]   ;;  %v96_v26 = vsel %vm10_vm1, %v362_v23, %v91_v24  ;;  %s120_s6 = smov 192  ;;  %s129_s11 = smov 3  ;;  %vm214_vm12 = vcmask 523712   ;;  %vm236_vm13 = vcmask 458112  }
   0xc   :  { %v365_v28 = vld [vmem:[%s736_s0 + $0xb] ss:$16 sm:%s110_s29]   ;;  %v101_v29 = vsel %vm14_vm2, %v363_v25, %v96_v26  ;;  %s426_s12 = smov 96   ;;  %v368_v34 = vld [vmem:[%s736_s0 + $0xa] ss:$16 sm:%s129_s11]   ;;  %s132_s15 = smov 12 }
   0xd   :  { %v113_v30 = vsel %vm6_vm0, %v365_v28, %v364_v27  ;;  %v366_v31 = vld [vmem:[%s736_s0 + $0xb] ss:$16 sm:%s115_s5]   ;;  %102 = vrot.lane.b32.xlu1 %v101_v29, %s426_s12  ;;  %s137_s16 = smov 48  ;;  %s142_s21 = smov 192  ;;  %vm258_vm14 = vcmask 392512   ;;  %vm280_vm15 = vcmask 326912  }
   0xe   :  { %v367_v32 = vld [vmem:[%s736_s0 + $0xb] ss:$16 sm:%s120_s6]   ;;  %v118_v33 = vsel %vm10_vm1, %v366_v31, %v113_v30  ;;  %v369_v36 = vld [vmem:[%s736_s0 + $0xa] ss:$16 sm:%s132_s15]   ;;  %s427_s22 = smov 88   ;;  %s151_s25 = smov 3 }
   0xf   :  { %v123_v35 = vsel %vm14_vm2, %v367_v32, %v118_v33  ;;  %v370_v37 = vld [vmem:[%s736_s0 + $0xa] ss:$16 sm:%s137_s16]   ;;  %v135_v38 = vsel %vm6_vm0, %v369_v36, %v368_v34  ;;  %s154_s26 = smov 12  ;;  %v372_v41 = vld [vmem:[%s736_s0 + $0x9] ss:$16 sm:%s151_s25]   ;;  %s159_s2 = smov 48 }
  0x10   :  { %124 = vrot.lane.b32.xlu0 %v123_v35, %s427_s22  ;;  %v371_v39 = vld [vmem:[%s736_s0 + $0xa] ss:$16 sm:%s142_s21]   ;;  %v140_v40 = vsel %vm10_vm1, %v370_v37, %v135_v38  ;;  %s164_s3 = smov 192  ;;  %s173_s8 = smov 3 }
  0x11   :  { %v373_v42 = vld [vmem:[%s736_s0 + $0x9] ss:$16 sm:%s154_s26]   ;;  %v145_v43 = vsel %vm14_vm2, %v371_v39, %v140_v40  ;;  %s428_s9 = smov 80   ;;  %v376_v48 = vld [vmem:[%s736_s0 + $0x8] ss:$16 sm:%s173_s8]   ;;  %s176_s12 = smov 12 }
  0x12   :  { %v157_v44 = vsel %vm6_vm0, %v373_v42, %v372_v41  ;;  %v374_v45 = vld [vmem:[%s736_s0 + $0x9] ss:$16 sm:%s159_s2]   ;;  %146 = vrot.lane.b32.xlu1 %v145_v43, %s428_s9  ;;  %s181_s13 = smov 48  ;;  %s186_s18 = smov 192 }
  0x13   :  { %v375_v46 = vld [vmem:[%s736_s0 + $0x9] ss:$16 sm:%s164_s3]   ;;  %v162_v47 = vsel %vm10_vm1, %v374_v45, %v157_v44  ;;  %v377_v50 = vld [vmem:[%s736_s0 + $0x8] ss:$16 sm:%s176_s12]   ;;  %s429_s19 = smov 72   ;;  %s195_s22 = smov 3 }
  0x14   :  { %v167_v49 = vsel %vm14_vm2, %v375_v46, %v162_v47  ;;  %v378_v51 = vld [vmem:[%s736_s0 + $0x8] ss:$16 sm:%s181_s13]   ;;  %v179_v52 = vsel %vm6_vm0, %v377_v50, %v376_v48  ;;  %s198_s23 = smov 12  ;;  %v380_v55 = vld [vmem:[%s736_s0 + $0x7] ss:$16 sm:%s195_s22]   ;;  %s203_s28 = smov 48 }
  0x15   :  { %168 = vrot.lane.b32.xlu0 %v167_v49, %s429_s19  ;;  %v379_v53 = vld [vmem:[%s736_s0 + $0x8] ss:$16 sm:%s186_s18]   ;;  %v184_v54 = vsel %vm10_vm1, %v378_v51, %v179_v52  ;;  %s208_s29 = smov 192  ;;  %s217_s5 = smov 3 }
  0x16   :  { %v381_v56 = vld [vmem:[%s736_s0 + $0x7] ss:$16 sm:%s198_s23]   ;;  %v189_v57 = vsel %vm14_vm2, %v379_v53, %v184_v54  ;;  %s430_s6 = smov 64   ;;  %v384_v62 = vld [vmem:[%s736_s0 + $0x6] ss:$16 sm:%s217_s5]   ;;  %s220_s9 = smov 12 }
  0x17   :  { %v201_v58 = vsel %vm6_vm0, %v381_v56, %v380_v55  ;;  %v382_v59 = vld [vmem:[%s736_s0 + $0x7] ss:$16 sm:%s203_s28]   ;;  %190 = vrot.lane.b32.xlu1 %v189_v57, %s430_s6  ;;  %s225_s10 = smov 48  ;;  %s230_s15 = smov 192 }
  0x18   :  { %v383_v60 = vld [vmem:[%s736_s0 + $0x7] ss:$16 sm:%s208_s29]   ;;  %v206_v61 = vsel %vm10_vm1, %v382_v59, %v201_v58  ;;  %v385_v0 = vld [vmem:[%s736_s0 + $0x6] ss:$16 sm:%s220_s9]   ;;  %s431_s16 = smov 56   ;;  %s239_s19 = smov 3 }
  0x19   :  { %v211_v63 = vsel %vm14_vm2, %v383_v60, %v206_v61  ;;  %v386_v1 = vld [vmem:[%s736_s0 + $0x6] ss:$16 sm:%s225_s10]   ;;  %v223_v2 = vsel %vm6_vm0, %v385_v0, %v384_v62  ;;  %s242_s20 = smov 12  ;;  %v388_v5 = vld [vmem:[%s736_s0 + $0x5] ss:$16 sm:%s239_s19]   ;;  %s247_s25 = smov 48 }
  0x1a   :  { %212 = vrot.lane.b32.xlu0 %v211_v63, %s431_s16  ;;  %v387_v3 = vld [vmem:[%s736_s0 + $0x6] ss:$16 sm:%s230_s15]   ;;  %v228_v4 = vsel %vm10_vm1, %v386_v1, %v223_v2  ;;  %s252_s26 = smov 192  ;;  %s261_s2 = smov 3 }
  0x1b   :  { %v389_v6 = vld [vmem:[%s736_s0 + $0x5] ss:$16 sm:%s242_s20]   ;;  %v233_v7 = vsel %vm14_vm2, %v387_v3, %v228_v4  ;;  %s432_s3 = smov 48   ;;  %v392_v12 = vld [vmem:[%s736_s0 + $0x4] ss:$16 sm:%s261_s2]   ;;  %s264_s6 = smov 12 }
  0x1c   :  { %v245_v8 = vsel %vm6_vm0, %v389_v6, %v388_v5  ;;  %v390_v9 = vld [vmem:[%s736_s0 + $0x5] ss:$16 sm:%s247_s25]   ;;  %234 = vrot.lane.b32.xlu1 %v233_v7, %s432_s3  ;;  %s269_s7 = smov 48  ;;  %s274_s12 = smov 192 }
  0x1d   :  { %v391_v10 = vld [vmem:[%s736_s0 + $0x5] ss:$16 sm:%s252_s26]   ;;  %v250_v11 = vsel %vm10_vm1, %v390_v9, %v245_v8  ;;  %v393_v14 = vld [vmem:[%s736_s0 + $0x4] ss:$16 sm:%s264_s6]   ;;  %s433_s13 = smov 40   ;;  %s283_s16 = smov 3 }
  0x1e   :  { %v255_v13 = vsel %vm14_vm2, %v391_v10, %v250_v11  ;;  %v394_v15 = vld [vmem:[%s736_s0 + $0x4] ss:$16 sm:%s269_s7]   ;;  %v267_v16 = vsel %vm6_vm0, %v393_v14, %v392_v12  ;;  %s286_s17 = smov 12  ;;  %v396_v19 = vld [vmem:[%s736_s0 + $0x3] ss:$16 sm:%s283_s16]   ;;  %s291_s22 = smov 48 }
  0x1f   :  { %256 = vrot.lane.b32.xlu0 %v255_v13, %s433_s13  ;;  %v395_v17 = vld [vmem:[%s736_s0 + $0x4] ss:$16 sm:%s274_s12]   ;;  %v272_v18 = vsel %vm10_vm1, %v394_v15, %v267_v16  ;;  %s296_s23 = smov 192  ;;  %s305_s28 = smov 3 }
  0x20   :  { %v397_v20 = vld [vmem:[%s736_s0 + $0x3] ss:$16 sm:%s286_s17]   ;;  %v277_v21 = vsel %vm14_vm2, %v395_v17, %v272_v18  ;;  %s434_s29 = smov 32   ;;  %v400_v26 = vld [vmem:[%s736_s0 + $0x2] ss:$16 sm:%s305_s28]   ;;  %s308_s3 = smov 12 }
  0x21   :  { %v289_v22 = vsel %vm6_vm0, %v397_v20, %v396_v19  ;;  %v398_v23 = vld [vmem:[%s736_s0 + $0x3] ss:$16 sm:%s291_s22]   ;;  %278 = vrot.lane.b32.xlu1 %v277_v21, %s434_s29  ;;  %s313_s4 = smov 48  ;;  %s318_s9 = smov 192 }
  0x22   :  { %v399_v24 = vld [vmem:[%s736_s0 + $0x3] ss:$16 sm:%s296_s23]   ;;  %v294_v25 = vsel %vm10_vm1, %v398_v23, %v289_v22  ;;  %v401_v28 = vld [vmem:[%s736_s0 + $0x2] ss:$16 sm:%s308_s3]   ;;  %s435_s10 = smov 24   ;;  %s327_s13 = smov 3 }
  0x23   :  { %v299_v27 = vsel %vm14_vm2, %v399_v24, %v294_v25  ;;  %v402_v29 = vld [vmem:[%s736_s0 + $0x2] ss:$16 sm:%s313_s4]   ;;  %v311_v30 = vsel %vm6_vm0, %v401_v28, %v400_v26  ;;  %s330_s14 = smov 12  ;;  %v404_v33 = vld [vmem:[%s736_s0 + $0x1] ss:$16 sm:%s327_s13]   ;;  %s335_s19 = smov 48 }
  0x24   :  { %300 = vrot.lane.b32.xlu0 %v299_v27, %s435_s10  ;;  %v403_v31 = vld [vmem:[%s736_s0 + $0x2] ss:$16 sm:%s318_s9]   ;;  %v316_v32 = vsel %vm10_vm1, %v402_v29, %v311_v30  ;;  %s340_s20 = smov 192  ;;  %s2_s25 = smov 3 }
  0x25   :  { %v405_v34 = vld [vmem:[%s736_s0 + $0x1] ss:$16 sm:%s330_s14]   ;;  %v321_v35 = vsel %vm14_vm2, %v403_v31, %v316_v32  ;;  %s436_s26 = smov 16   ;;  %s4_s27 = smov 12  ;;  %v3_v40 = vld [vmem:[%s736_s0] ss:$16 sm:%s2_s25]  }
  0x26   :  { %v333_v36 = vsel %vm6_vm0, %v405_v34, %v404_v33  ;;  %v406_v37 = vld [vmem:[%s736_s0 + $0x1] ss:$16 sm:%s335_s19]   ;;  %322 = vrot.lane.b32.xlu1 %v321_v35, %s436_s26  ;;  %s8_s28 = smov 48  ;;  %s12_s2 = smov 192 }
  0x27   :  { %v407_v38 = vld [vmem:[%s736_s0 + $0x1] ss:$16 sm:%s340_s20]   ;;  %v338_v39 = vsel %vm10_vm1, %v406_v37, %v333_v36  ;;  %v5_v42 = vld [vmem:[%s736_s0] ss:$16 sm:%s4_s27]   ;;  %s437_s7 = smov 8  }
  0x28   :  { %v343_v41 = vsel %vm14_vm2, %v407_v38, %v338_v39  ;;  %v9_v43 = vld [vmem:[%s736_s0] ss:$16 sm:%s8_s28]   ;;  %v7_v44 = vsel %vm6_vm0, %v5_v42, %v3_v40  ;;  %vm302_vm0 = vcmask 261312  }
  0x29   :  { %344 = vrot.lane.b32.xlu0 %v343_v41, %s437_s7  ;;  %v13_v45 = vld [vmem:[%s736_s0] ss:$16 sm:%s12_s2]   ;;  %v11_v46 = vsel %vm10_vm1, %v9_v43, %v7_v44  ;;  %vm324_vm1 = vcmask 195712  }
  0x2a   :  { %v15_v47 = vsel %vm14_vm2, %v13_v45, %v11_v46  ;;  %vm346_vm2 = vcmask 130112  }
  0x2b   :  { %17 = vst.msk [vmem:[%s737_s1] sm:$0xff] %vm16_vm3, %v15_v47  }
  0x78   :  { %v37_v48 = vpop.permute.xlu0 %36  }
  0x79   :  { %39 = vst.msk [vmem:[%s737_s1] sm:$0xff] %vm38_vm4, %v37_v48  }
  0x7a   :  { %v81_v49 = vpop.permute.xlu1 %80  }
  0x7d   :  { %v59_v50 = vpop.permute.xlu0 %58  }
  0x7e   :  { %61 = vst.msk [vmem:[%s737_s1] sm:$0xff] %vm60_vm5, %v59_v50  }
  0x7f   :  { %83 = vst.msk [vmem:[%s737_s1] sm:$0xff] %vm82_vm6, %v81_v49   ;;  %v103_v51 = vpop.permute.xlu1 %102  }
  0x80   :  { %105 = vst.msk [vmem:[%s737_s1] sm:$0xff] %vm104_vm7, %v103_v51  }
  0x82   :  { %v125_v52 = vpop.permute.xlu0 %124  }
  0x83   :  { %127 = vst.msk [vmem:[%s737_s1] sm:$0xff] %vm126_vm8, %v125_v52  }
  0x84   :  { %v147_v53 = vpop.permute.xlu1 %146  }
  0x85   :  { %149 = vst.msk [vmem:[%s737_s1] sm:$0xff] %vm148_vm9, %v147_v53  }
  0x87   :  { %v169_v54 = vpop.permute.xlu0 %168  }
  0x88   :  { %171 = vst.msk [vmem:[%s737_s1] sm:$0xff] %vm170_vm10, %v169_v54  }
  0x89   :  { %v191_v55 = vpop.permute.xlu1 %190  }
  0x8a   :  { %193 = vst.msk [vmem:[%s737_s1] sm:$0xff] %vm192_vm11, %v191_v55  }
  0x8c   :  { %v213_v56 = vpop.permute.xlu0 %212  }
  0x8d   :  { %215 = vst.msk [vmem:[%s737_s1] sm:$0xff] %vm214_vm12, %v213_v56  }
  0x8e   :  { %v235_v57 = vpop.permute.xlu1 %234  }
  0x8f   :  { %237 = vst.msk [vmem:[%s737_s1] sm:$0xff] %vm236_vm13, %v235_v57  }
  0x91   :  { %v257_v58 = vpop.permute.xlu0 %256  }
  0x92   :  { %259 = vst.msk [vmem:[%s737_s1] sm:$0xff] %vm258_vm14, %v257_v58  }
  0x93   :  { %v279_v59 = vpop.permute.xlu1 %278  }
  0x94   :  { %281 = vst.msk [vmem:[%s737_s1] sm:$0xff] %vm280_vm15, %v279_v59  }
  0x96   :  { %v301_v60 = vpop.permute.xlu0 %300  }
  0x97   :  { %303 = vst.msk [vmem:[%s737_s1] sm:$0xff] %vm302_vm0, %v301_v60  }
  0x98   :  { %v323_v61 = vpop.permute.xlu1 %322  }
  0x99   :  { %325 = vst.msk [vmem:[%s737_s1] sm:$0xff] %vm324_vm1, %v323_v61  }
  0x9b   :  { %v345_v62 = vpop.permute.xlu0 %344  }
  0x9c   :  { %347 = vst.msk [vmem:[%s737_s1] sm:$0xff] %vm346_vm2, %v345_v62  }

// kernel: downsample_layer_forward.1
= control target key start
LH: loop header
LB: loop body
LE: loop exit
PB: predicated region body
PF: predicated region fallthrough
CT: control target
= control target key end

     0   :  { %s2863_s29 = smov 0   ;;  %s3327_s0 = inlined_call_operand.vmem [shape: f32[2,16,64], index: 0, kind: input, shape index: {}]   ;;  %s3328_s1 = inlined_call_operand.vmem [shape: bf16[3,64,128], index: 1, kind: input, shape index: {}]   ;;  %s3329_s2 = inlined_call_operand.vmem [shape: f32[1,128], index: 2, kind: input, shape index: {}]   ;;  %s3330_s3 = inlined_call_operand.vmem [shape: f32[1,128], index: 3, kind: input, shape index: {}]   ;;  %s3331_s4 = inlined_call_operand.vmem [shape: bf16[3,128,128], index: 4, kind: input, shape index: {}]   ;;  %s3332_s5 = inlined_call_operand.vmem [shape: f32[1,128], index: 5, kind: input, shape index: {}]   ;;  %s3333_s6 = inlined_call_operand.vmem [shape: f32[1,128], index: 6, kind: input, shape index: {}]   ;;  %s3334_s7 = inlined_call_operand.vmem [shape: bf16[3,128,64], index: 7, kind: input, shape index: {}]   ;;  %s3335_s8 = inlined_call_operand.vmem [shape: f32[1,64], index: 8, kind: input, shape index: {}]   ;;  %s3336_s9 = inlined_call_operand.vmem [shape: f32[1,64], index: 9, kind: input, shape index: {}]   ;;  %s3337_s10 = inlined_call_operand.vmem [shape: f32[128,8], index: 10, kind: input, shape index: {}]   ;;  %s3338_s11 = inlined_call_operand.vmem [shape: f32[1,8], index: 11, kind: input, shape index: {}]   ;;  %s3339_s12 = inlined_call_operand.vmem [shape: f32[8,128], index: 12, kind: input, shape index: {}]   ;;  %s3340_s13 = inlined_call_operand.vmem [shape: f32[2,16,128], index: 13, kind: output, shape index: {0}]   ;;  %s3341_s14 = inlined_call_operand.vmem [shape: f32[2,8,64], index: 14, kind: output, shape index: {1}]  }
   0x1 LB: > { %s2118_s30 = sadd.s32 4294967295, %s2783_s29   ;;  %p2122_p0 = scmp.ge.s32.totalorder %s2783_s29, 1  ;;  %s2783_s29 = sphi %s2863_s29, %s25_s29  }
   0x2   : > { %p415_p1 = scmp.lt.s32.totalorder %s2783_s29, 3 }
   0x4   : > { %p416_p2 = pnand %p2122_p0, %p415_p1 }
   0x5   : > { %p465_p3 = scmp.lt.s32.totalorder (!%p416_p2), %s2118_s30, 1  ;;  %v483_v0 = vlaneseq (!%p416_p2)  ;;  %v2785_v1 = vmov (!%p416_p2), 0.0   ;;  %vm2786_vm0 = vmmov (!%p416_p2), 0   ;;  %vm497_vm2 = vcmask (!%p416_p2), 130048   ;;  %v2713_v17 = vld [vmem:[%s3328_s1 + $0x20] sm:$0xff] (!%p416_p2)   ;;  %v2714_v21 = vld [vmem:[%s3328_s1 + $0x28] sm:$0xff] (!%p416_p2)  }
   0x6   : > { %419 = sbr.rel (%p416_p2) target bundleno = 2143 (0x85f), region = 72  ;;  %2413 = vmatprep.subr.bf16.mxu1 (!%p416_p2), %v2785_v1  ;;  %2415 = vmatprep.mubr.msk.bf16.mxu1 (!%p416_p2), %vm2786_vm0, %v2785_v1  ;;  %v2715_v23 = vld [vmem:[%s3328_s1 + $0x30] sm:$0xff] (!%p416_p2)   ;;  %v2716_v24 = vld [vmem:[%s3328_s1 + $0x38] sm:$0xff] (!%p416_p2)   ;;  %vm636_vm8 = vcmask (!%p416_p2), 523264   ;;  %v2717_v30 = vld [vmem:[%s3328_s1] sm:$0xff] (!%p416_p2)   ;;  %vm1469_vm9 = vcmask (!%p416_p2), 64512  }
   0x7   : > { %v2876_v2 = vshrl.u32 (!%p416_p2), %v483_v0, 7  ;;  %v2878_v3 = vand.u32 (!%p416_p2), 127, %v483_v0  ;;  %2407 = vmatprep.subr.bf16.mxu0 (!%p416_p2), %v2785_v1  ;;  %2409 = vmatprep.mubr.msk.bf16.mxu0 (!%p416_p2), %vm2786_vm0, %v2785_v1  ;;  %v2718_v36 = vld [vmem:[%s3328_s1 + $0x8] sm:$0xff] (!%p416_p2)   ;;  %v2719_v39 = vld [vmem:[%s3328_s1 + $0x10] sm:$0xff] (!%p416_p2)   ;;  %v2720_v43 = vld [vmem:[%s3328_s1 + $0x18] sm:$0xff] (!%p416_p2)  }
   0x8   : > { %v2721_v44 = vld [vmem:[%s3328_s1 + $0x40] sm:$0xff] (!%p416_p2)   ;;  %v2722_v45 = vld [vmem:[%s3328_s1 + $0x48] sm:$0xff] (!%p416_p2)   ;;  %v2723_v46 = vld [vmem:[%s3328_s1 + $0x50] sm:$0xff] (!%p416_p2)  }
   0x9   : > { %v485_v4 = vadd.s32 (!%p416_p2), 8, %v2876_v2  ;;  %vm551_vm1 = vcmp.eq.s32.totalorder (!%p416_p2), %v2878_v3, %v2876_v2  ;;  %v488_v5 = vadd.s32 (!%p416_p2), 4294967295, %v2876_v2  ;;  %v749_v6 = vadd.s32 (!%p416_p2), 1, %v2876_v2  ;;  %v2724_v47 = vld [vmem:[%s3328_s1 + $0x58] sm:$0xff] (!%p416_p2)   ;;  %v2168_v48 = vld [vmem:[%s3329_s2] ss:$0 sm:$0xff] (!%p416_p2) }
   0xa   : > { %v2131_v7 = vsel (!%p416_p2), %vm551_vm1, 1.0, %v2785_v1  ;;  %v2169_v50 = vld [vmem:[%s3330_s3] ss:$0 sm:$0xff] (!%p416_p2)  ;;  %v2726_v62 = vld [vmem:[%s3331_s4 + $0x48] sm:$0xff] (!%p416_p2)   ;;  %v2727_v63 = vld [vmem:[%s3331_s4 + $0x50] sm:$0xff] (!%p416_p2)  }
   0xb   : > { %vm552_vm3 = vcmp.eq.s32.totalorder (!%p416_p2), %v2878_v3, %v485_v4  ;;  %v489_v10 = vadd.s32 (!%p416_p2), 4294967295, %v485_v4  ;;  %vm490_vm4 = vcmp.eq.s32.totalorder (!%p416_p2), %v2878_v3, %v488_v5  ;;  %v750_v11 = vadd.s32 (!%p416_p2), 1, %v485_v4  ;;  %v2725_v61 = vld [vmem:[%s3331_s4 + $0x40] sm:$0xff] (!%p416_p2)   ;;  %v2728_v0 = vld [vmem:[%s3331_s4 + $0x58] sm:$0xff] (!%p416_p2)   ;;  %v2730_v5 = vld [vmem:[%s3331_s4 + $0x68] sm:$0xff] (!%p416_p2)  }
   0xc   : > { %v2132_v13 = vsel (!%p416_p2), %vm552_vm3, 1.0, %v2785_v1  ;;  %v2128_v14 = vsel (!%p416_p2), %vm490_vm4, 1.0, %v2785_v1  ;;  %vm751_vm5 = vcmp.eq.s32.totalorder (!%p416_p2), %v2878_v3, %v749_v6  ;;  %v2729_v4 = vld [vmem:[%s3331_s4 + $0x60] sm:$0xff] (!%p416_p2)   ;;  %v2731_v6 = vld [vmem:[%s3331_s4 + $0x70] sm:$0xff] (!%p416_p2)  }
   0xd   : > { %s3343_s30 = smov (!%p465_p3, %s2118_s30), 1  ;;  %v2900_v15 = vpack.c.bf16 %v2132_v13, %v2131_v7  ;;  %vm491_vm6 = vcmp.eq.s32.totalorder %v2878_v3, %v489_v10  ;;  %vm752_vm7 = vcmp.eq.s32.totalorder %v2878_v3, %v750_v11  ;;  %v2152_v16 = vsel %vm751_vm5, 1.0, %v2785_v1  ;;  %v2732_v7 = vld [vmem:[%s3331_s4 + $0x78] sm:$0xff]   ;;  %v1377_v10 = vld [vmem:[%s3337_s10 + $0x10] sm:$0xff] }
   0xe   : > { %s2299_s15 = sshll.u32 %s3343_s30, 4  ;;  %v2129_v18 = vsel %vm491_vm6, 1.0, %v2785_v1  ;;  %v2153_v19 = vsel %vm752_vm7, 1.0, %v2785_v1  ;;  %v2787_v11 = vmov 0.0|0.0   ;;  %v1378_v13 = vld [vmem:[%s3337_s10 + $0x18] sm:$0xff] }
   0xf   : > { %s469_s18 = scalar_lea.vmem %s3327_s0, %s2299_s15  ;;  %v2910_v20 = vpack.c.bf16 %v2129_v18, %v2128_v14  ;;  %v2927_v22 = vpack.c.bf16 %v2153_v19, %v2152_v16  ;;  %v2661_v14 = vpack.c.bf16 %v1378_v13, %v1377_v10  ;;  %s474_s19 = scalar_lea.vmem %s3340_s13, %s2299_s15 }
  0x10   : > { %v480_v8 = vld [vmem:[%s469_s18] sm:$0xff]  ;;  %v481_v9 = vld [vmem:[%s469_s18 + $0x8] sm:$0xff]  ;;  %s2127_s18 = sshll.u32 %s3343_s30, 3 }
  0x11   : > { %v482_v12 = vpack.c.bf16 %v481_v9, %v480_v8  ;;  %v1375_v8 = vld [vmem:[%s3337_s10] sm:$0xff]  ;;  %v1376_v9 = vld [vmem:[%s3337_s10 + $0x8] sm:$0xff]  ;;  %s478_s20 = scalar_lea.vmem %s3341_s14, %s2127_s18 }
  0x13   : > { %2414 = vmatpush3.bf16.msra.mxu1 %v482_v12  ;;  %2408 = vmatpush3.bf16.msra.mxu0 %v482_v12 }
  0x14   : > { %2443 = vmatprep.subr.bf16.mxu1 %v2785_v1  ;;  %2419 = vmatprep.subr.bf16.mxu0 %v2785_v1 }
  0x16   : > { %2416 = vmatmul.mubr.msk.bf16.vlgmr.msra.gmra.mrb[0].mxu1 %vm497_vm2, %v2900_v15  ;;  %2410 = vmatmul.mubr.msk.bf16.vlgmr.msra.gmra.mrb[0].mxu0 %vm497_vm2, %v2910_v20 }
  0x17   : > { %2444 = vmatpush3.bf16.msra.mxu1 %v482_v12  ;;  %2445 = vmatprep.mubr.msk.bf16.mxu1 %vm2786_vm0, %v2785_v1  ;;  %v2658_v12 = vpack.c.bf16 %v1376_v9, %v1375_v8 }
  0x18   : > { %2420 = vmatpush3.bf16.msra.mxu0 %v2713_v17  ;;  %2427 = vmatprep.mubr.msk.bf16.mxu0 %vm2786_vm0, %v2785_v1 }
  0x19   : > { %2421 = vmatprep.subr.bf16.mxu0 %v2785_v1  ;;  %2461 = vmatprep.subr.bf16.mxu1 %v2785_v1 }
  0x1c   : > { %2422 = vmatpush3.bf16.msra.mxu0 %v2714_v21 }
  0x1d   : > { %2423 = vmatprep.subr.bf16.mxu0 %v2785_v1 }
  0x1e   : > { %2446 = vmatmul.mubr.msk.bf16.vlgmr.msra.gmra.mrb[4].mxu1 %vm497_vm2, %v2927_v22 }
  0x1f   : > { %2463 = vmatprep.mubr.msk.bf16.mxu1 %vm2786_vm0, %v2785_v1 }
  0x20   : > { %2424 = vmatpush3.bf16.msra.mxu0 %v2715_v23 }
  0x21   : > { %2425 = vmatprep.subr.bf16.mxu0 %v2785_v1 }
  0x24   : > { %2426 = vmatpush3.bf16.msra.mxu0 %v2716_v24 }
  0x25   : > { %2431 = vmatprep.subr.bf16.mxu0 %v2785_v1 }
  0xe9   : > { %v595_v25 = vpop.f32.mrb[0].mxu1  ;;  %v535_v26 = vpop.f32.mrb[0].mxu0 }
  0xea   : > { %v2417_v27 = vpop.f32.mrb[1].mxu1  ;;  %v2411_v28 = vpop.f32.mrb[1].mxu0 }
  0xeb   : > { %v598_v29 = vpop.f32.mrb[2].mxu1  ;;  %v538_v31 = vpop.f32.mrb[2].mxu0  ;;  %v2733_v28 = vld [vmem:[%s3331_s4] sm:$0xff]  }
  0xec   : > { %v602_v32 = vpack.c.bf16 %v598_v29, %v595_v25  ;;  %v2418_v33 = vpop.f32.mrb[3].mxu1  ;;  %v542_v34 = vpack.c.bf16 %v538_v31, %v535_v26  ;;  %v2412_v35 = vpop.f32.mrb[3].mxu0  ;;  %v2734_v31 = vld [vmem:[%s3331_s4 + $0x8] sm:$0xff]  }
  0xed   : > { %v2736_v33 = vld [vmem:[%s3331_s4 + $0x18] sm:$0xff]   ;;  %v2738_v35 = vld [vmem:[%s3331_s4 + $0x28] sm:$0xff]  }
  0xee   : > { %2428 = vmatmul.mubr.msk.bf16.vlgmr.msra.gmra.mrb[4].mxu0 %vm636_vm8, %v602_v32  ;;  %v2735_v32 = vld [vmem:[%s3331_s4 + $0x10] sm:$0xff]  }
  0xef   : > { %2432 = vmatpush3.bf16.msra.mxu0 %v2717_v30  ;;  %2439 = vmatprep.mubr.msk.bf16.mxu0 %vm2786_vm0, %v2785_v1 }
  0xf0   : > { %2433 = vmatprep.subr.bf16.mxu0 %v2785_v1 }
  0xf1   : > { %v795_v37 = vpop.f32.mrb[4].mxu1 }
  0xf2   : > { %v2447_v38 = vpop.f32.mrb[5].mxu1 }
  0xf3   : > { %2434 = vmatpush3.bf16.msra.mxu0 %v2718_v36  ;;  %v798_v40 = vpop.f32.mrb[6].mxu1  ;;  %v2739_v36 = vld [vmem:[%s3331_s4 + $0x30] sm:$0xff]   ;;  %v2741_v38 = vld [vmem:[%s3331_s4 + $0x80] sm:$0xff]  }
  0xf4   : > { %2435 = vmatprep.subr.bf16.mxu0 %v2785_v1  ;;  %v802_v41 = vpack.c.bf16 %v798_v40, %v795_v37  ;;  %v2448_v42 = vpop.f32.mrb[7].mxu1  ;;  %v2740_v37 = vld [vmem:[%s3331_s4 + $0x38] sm:$0xff]   ;;  %v2743_v40 = vld [vmem:[%s3331_s4 + $0x90] sm:$0xff]  }
  0xf5   : > { %v2745_v42 = vld [vmem:[%s3331_s4 + $0xa0] sm:$0xff]  }
  0xf7   : > { %2436 = vmatpush3.bf16.msra.mxu0 %v2719_v39  ;;  %v2742_v39 = vld [vmem:[%s3331_s4 + $0x88] sm:$0xff]  }
  0xf8   : > { %2437 = vmatprep.subr.bf16.mxu0 %v2785_v1 }
  0xfb   : > { %2438 = vmatpush3.bf16.msra.mxu0 %v2720_v43  ;;  %v2746_v43 = vld [vmem:[%s3331_s4 + $0xa8] sm:$0xff]  }
  0xfc   : > { %2449 = vmatprep.subr.bf16.mxu0 %v2785_v1 }
  0xfe   : > { %2440 = vmatmul.mubr.msk.bf16.vlgmr.msra.gmra.mrb[4].mxu0 %vm636_vm8, %v542_v34  ;;  %v2737_v34 = vld [vmem:[%s3331_s4 + $0x20] sm:$0xff]  }
  0xff   : > { %2450 = vmatpush3.bf16.msra.mxu0 %v2721_v44  ;;  %2457 = vmatprep.mubr.msk.bf16.mxu0 %vm2786_vm0, %v2785_v1  ;;  %v2747_v44 = vld [vmem:[%s3331_s4 + $0xb0] sm:$0xff]  }
 0x100   : > { %2451 = vmatprep.subr.bf16.mxu0 %v2785_v1 }
 0x103   : > { %2452 = vmatpush3.bf16.msra.mxu0 %v2722_v45  ;;  %v2748_v45 = vld [vmem:[%s3331_s4 + $0xb8] sm:$0xff]  }
 0x104   : > { %2453 = vmatprep.subr.bf16.mxu0 %v2785_v1 }
 0x107   : > { %2454 = vmatpush3.bf16.msra.mxu0 %v2723_v46  ;;  %v1379_v46 = vld [vmem:[%s3337_s10 + $0x20] sm:$0xff] }
 0x108   : > { %2455 = vmatprep.subr.bf16.mxu0 %v2785_v1 }
 0x10b   : > { %2456 = vmatpush3.bf16.msra.mxu0 %v2724_v47  ;;  %v1380_v47 = vld [vmem:[%s3337_s10 + $0x28] sm:$0xff] }
 0x10c   : > { %2513 = vmatprep.subr.bf16.mxu0 %v2785_v1 }
 0x10e   : > { %2458 = vmatmul.mubr.msk.bf16.vlgmr.msra.gmra.mrb[4].mxu0 %vm636_vm8, %v802_v41  ;;  %v2744_v41 = vld [vmem:[%s3331_s4 + $0x98] sm:$0xff]  }
 0x10f   : > { %2515 = vmatprep.mubr.msk.bf16.mxu0 %vm2786_vm0, %v2785_v1 }
 0x1e1   : > { %v873_v49 = vpop.f32.mrb[4].mxu0 }
 0x1e2   : > { %v889_v51 = vmul.f32 %v2168_v48, %v873_v49  ;;  %v2459_v52 = vpop.f32.mrb[5].mxu0  ;;  %v1381_v49 = vld [vmem:[%s3337_s10 + $0x30] sm:$0xff] }
 0x1e3   : > { %v876_v53 = vpop.f32.mrb[6].mxu0  ;;  %v1383_v52 = vld [vmem:[%s3337_s10 + $0x40] sm:$0xff] }
 0x1e4   : > { %v898_v54 = vadd.f32 %v2169_v50, %v889_v51  ;;  %v890_v55 = vmul.f32 %v2168_v48, %v876_v53  ;;  %v2460_v56 = vpop.f32.mrb[7].mxu0  ;;  %v2664_v48 = vpack.c.bf16 %v1380_v47, %v1379_v46  ;;  %v1384_v53 = vld [vmem:[%s3337_s10 + $0x48] sm:$0xff] }
 0x1e5   : > { %v1386_v56 = vld [vmem:[%s3337_s10 + $0x58] sm:$0xff] }
 0x1e6   : > { %v899_v57 = vadd.f32 %v2169_v50, %v890_v55  ;;  %v900_v58 = vmax.f32 %v898_v54, 0.0  ;;  %v1382_v50 = vld [vmem:[%s3337_s10 + $0x38] sm:$0xff]  ;;  %v2670_v54 = vpack.c.bf16 %v1384_v53, %v1383_v52  ;;  %v1385_v55 = vld [vmem:[%s3337_s10 + $0x50] sm:$0xff]  ;;  %v2757_v53 = vld [vmem:[%s3334_s7 + $0x20] sm:$0xff]  }
 0x1e7   : > { %v2667_v51 = vpack.c.bf16 %v1382_v50, %v1381_v49  ;;  %v2749_v49 = vld [vmem:[%s3334_s7] sm:$0xff]   ;;  %v2751_v50 = vld [vmem:[%s3334_s7 + $0x8] sm:$0xff]   ;;  %v2755_v52 = vld [vmem:[%s3334_s7 + $0x18] sm:$0xff]  }
 0x1e8   : > { %v901_v59 = vmax.f32 %v899_v57, 0.0  ;;  %v2673_v57 = vpack.c.bf16 %v1386_v56, %v1385_v55  ;;  %v2761_v55 = vld [vmem:[%s3334_s7 + $0x30] sm:$0xff]   ;;  %v2763_v56 = vld [vmem:[%s3334_s7 + $0x38] sm:$0xff]  }
 0x1ea   : > { %v902_v60 = vpack.c.bf16 %v901_v59, %v900_v58  ;;  %v1387_v58 = vld [vmem:[%s3337_s10 + $0x60] sm:$0xff]  ;;  %v1388_v59 = vld [vmem:[%s3337_s10 + $0x68] sm:$0xff] }
 0x1ec   : > { %2462 = vmatpush3.bf16.msra.mxu1 %v902_v60  ;;  %2514 = vmatpush3.bf16.msra.mxu0 %v902_v60 }
 0x1ed   : > { %2467 = vmatprep.subr.bf16.mxu1 %v2785_v1  ;;  %2657 = vmatprep.subr.bf16.mxu0 %v2787_v11 }
 0x1ef   : > { %2464 = vmatmul.mubr.msk.bf16.vlgmr.msra.gmra.mrb[8].mxu1 %vm497_vm2, %v2910_v20  ;;  %2516 = vmatmul.mubr.msk.bf16.vlgmr.msra.gmra.mrb[8].mxu0 %vm497_vm2, %v2927_v22 }
 0x1f0   : > { %2468 = vmatpush3.bf16.msra.mxu1 %v902_v60  ;;  %2469 = vmatprep.mubr.msk.bf16.mxu1 %vm2786_vm0, %v2785_v1  ;;  %v2676_v60 = vpack.c.bf16 %v1388_v59, %v1387_v58  ;;  %v2764_v58 = vld [vmem:[%s3334_s7 + $0x78] sm:$0xff]  }
 0x1f1   : > { %2473 = vmatprep.subr.bf16.mxu1 %v2785_v1  ;;  %2571 = vmatprep.mubr.msk.f32.mxu0 %vm2786_vm0, %v2785_v1 }
 0x1f2   : > { %2659 = vmatpush3.bf16.msra.mxu0 %v2658_v12 }
 0x1f3   : > { %2660 = vmatprep.subr.bf16.mxu0 %v2787_v11 }
 0x1f6   : > { %2662 = vmatpush3.bf16.msra.mxu0 %v2661_v14 }
 0x1f7   : > { %2470 = vmatmul.mubr.msk.bf16.vlgmr.msra.gmra.mrb[12].mxu1 %vm497_vm2, %v2900_v15  ;;  %2663 = vmatprep.subr.bf16.mxu0 %v2787_v11 }
 0x1f8   : > { %2474 = vmatpush3.bf16.msra.mxu1 %v2725_v61  ;;  %2489 = vmatprep.mubr.msk.bf16.mxu1 %vm2786_vm0, %v2785_v1  ;;  %v1389_v61 = vld [vmem:[%s3337_s10 + $0x70] sm:$0xff] }
 0x1f9   : > { %2475 = vmatprep.subr.bf16.mxu1 %v2785_v1 }
 0x1fa   : > { %2665 = vmatpush3.bf16.msra.mxu0 %v2664_v48 }
 0x1fb   : > { %2666 = vmatprep.subr.bf16.mxu0 %v2787_v11 }
 0x1fc   : > { %2476 = vmatpush3.bf16.msra.mxu1 %v2726_v62  ;;  %v1390_v62 = vld [vmem:[%s3337_s10 + $0x78] sm:$0xff] }
 0x1fd   : > { %2477 = vmatprep.subr.bf16.mxu1 %v2785_v1 }
 0x1fe   : > { %2668 = vmatpush3.bf16.msra.mxu0 %v2667_v51  ;;  %v2753_v51 = vld [vmem:[%s3334_s7 + $0x10] sm:$0xff]  }
 0x1ff   : > { %2669 = vmatprep.subr.bf16.mxu0 %v2787_v11 }
 0x200   : > { %2478 = vmatpush3.bf16.msra.mxu1 %v2727_v63  ;;  %v2679_v63 = vpack.c.bf16 %v1390_v62, %v1389_v61 }
 0x201   : > { %2479 = vmatprep.subr.bf16.mxu1 %v2785_v1 }
 0x202   : > { %2671 = vmatpush3.bf16.msra.mxu0 %v2670_v54  ;;  %v2759_v54 = vld [vmem:[%s3334_s7 + $0x28] sm:$0xff]  }
 0x203   : > { %2672 = vmatprep.subr.bf16.mxu0 %v2787_v11 }
 0x204   : > { %2480 = vmatpush3.bf16.msra.mxu1 %v2728_v0  ;;  %v2229_v0 = vld [vmem:[%s3332_s5] ss:$0 sm:$0xff] }
 0x205   : > { %2481 = vmatprep.subr.bf16.mxu1 %v2785_v1 }
 0x206   : > { %2674 = vmatpush3.bf16.msra.mxu0 %v2673_v57  ;;  %v2762_v57 = vld [vmem:[%s3334_s7 + $0x70] sm:$0xff]  }
 0x207   : > { %2675 = vmatprep.subr.bf16.mxu0 %v2787_v11 }
 0x208   : > { %2482 = vmatpush3.bf16.msra.mxu1 %v2729_v4 }
 0x209   : > { %2483 = vmatprep.subr.bf16.mxu1 %v2785_v1 }
 0x20a   : > { %2677 = vmatpush3.bf16.msra.mxu0 %v2676_v60  ;;  %v2765_v60 = vld [vmem:[%s3334_s7 + $0x80] sm:$0xff]  }
 0x20b   : > { %2678 = vmatprep.subr.bf16.mxu0 %v2787_v11 }
 0x20c   : > { %2484 = vmatpush3.bf16.msra.mxu1 %v2730_v5  ;;  %v2230_v5 = vld [vmem:[%s3333_s6] ss:$0 sm:$0xff] }
 0x20d   : > { %2485 = vmatprep.subr.bf16.mxu1 %v2785_v1 }
 0x20e   : > { %2680 = vmatpush3.bf16.msra.mxu0 %v2679_v63 }
 0x20f   : > { %2574 = vmatprep.subr.mxu0 %v2785_v1 }
 0x210   : > { %2486 = vmatpush3.bf16.msra.mxu1 %v2731_v6 }
 0x211   : > { %2487 = vmatprep.subr.bf16.mxu1 %v2785_v1 }
 0x214   : > { %2488 = vmatpush3.bf16.msra.mxu1 %v2732_v7 }
 0x215   : > { %2493 = vmatprep.subr.bf16.mxu1 %v2785_v1 }
 0x2c2   : > { %v937_v15 = vpop.f32.mrb[8].mxu1  ;;  %v3050_v16 = vpop.f32.mrb[8].mxu0 }
 0x2c3   : > { %v2465_v17 = vpop.f32.mrb[9].mxu1  ;;  %v2517_v18 = vpop.f32.mrb[9].mxu0 }
 0x2c4   : > { %v940_v19 = vpop.f32.mrb[10].mxu1  ;;  %v1235_v20 = vpop.f32.mrb[10].mxu0 }
 0x2c5   : > { %v944_v21 = vpack.c.bf16 %v940_v19, %v937_v15  ;;  %v2466_v22 = vpop.f32.mrb[11].mxu1  ;;  %v1239_v23 = vpack.c.bf16 %v1235_v20, %v3050_v16  ;;  %v2518_v24 = vpop.f32.mrb[11].mxu0 }
 0x2c6   : > { %v1468_v22 = vld [vmem:[%s3339_s12] sm:$0xff] }
 0x2ca   : > { %v995_v25 = vpop.f32.mrb[12].mxu1 }
 0x2cb   : > { %v2471_v26 = vpop.f32.mrb[13].mxu1 }
 0x2cc   : > { %v998_v27 = vpop.f32.mrb[14].mxu1 }
 0x2cd   : > { %v1002_v29 = vpack.c.bf16 %v998_v27, %v995_v25  ;;  %v2472_v30 = vpop.f32.mrb[15].mxu1 }
 0x2cf   : > { %2490 = vmatmul.mubr.bf16.vlgmr.msra.gmra.mrb[16].mxu1 %v1002_v29 }
 0x2d0   : > { %2494 = vmatpush3.bf16.msra.mxu1 %v2733_v28  ;;  %2509 = vmatprep.mubr.msk.bf16.mxu1 %vm2786_vm0, %v2785_v1 }
 0x2d1   : > { %2495 = vmatprep.subr.bf16.mxu1 %v2785_v1 }
 0x2d4   : > { %2496 = vmatpush3.bf16.msra.mxu1 %v2734_v31  ;;  %v2750_v31 = vld [vmem:[%s3334_s7 + $0x40] sm:$0xff]  }
 0x2d5   : > { %2497 = vmatprep.subr.bf16.mxu1 %v2785_v1 }
 0x2d8   : > { %2498 = vmatpush3.bf16.msra.mxu1 %v2735_v32  ;;  %v2752_v32 = vld [vmem:[%s3334_s7 + $0x48] sm:$0xff]  }
 0x2d9   : > { %2499 = vmatprep.subr.bf16.mxu1 %v2785_v1 }
 0x2dc   : > { %2500 = vmatpush3.bf16.msra.mxu1 %v2736_v33  ;;  %v2754_v33 = vld [vmem:[%s3334_s7 + $0x50] sm:$0xff]  }
 0x2dd   : > { %2501 = vmatprep.subr.bf16.mxu1 %v2785_v1 }
 0x2e0   : > { %2502 = vmatpush3.bf16.msra.mxu1 %v2737_v34  ;;  %v2756_v34 = vld [vmem:[%s3334_s7 + $0x58] sm:$0xff]  }
 0x2e1   : > { %2503 = vmatprep.subr.bf16.mxu1 %v2785_v1 }
 0x2e4   : > { %2504 = vmatpush3.bf16.msra.mxu1 %v2738_v35  ;;  %v2758_v35 = vld [vmem:[%s3334_s7 + $0x60] sm:$0xff]  }
 0x2e5   : > { %2505 = vmatprep.subr.bf16.mxu1 %v2785_v1 }
 0x2e8   : > { %2506 = vmatpush3.bf16.msra.mxu1 %v2739_v36  ;;  %v2760_v36 = vld [vmem:[%s3334_s7 + $0x68] sm:$0xff]  }
 0x2e9   : > { %2507 = vmatprep.subr.bf16.mxu1 %v2785_v1 }
 0x2ec   : > { %2508 = vmatpush3.bf16.msra.mxu1 %v2740_v37  ;;  %v3207_v37 = vmul.u32 2, %v2876_v2 }
 0x2ed   : > { %2519 = vmatprep.subr.bf16.mxu1 %v2785_v1 }
 0x2ee   : > { %vm1618_vm11 = vcmp.eq.s32.totalorder %v2878_v3, %v3207_v37 }
 0x2ef   : > { %2510 = vmatmul.mubr.bf16.vlgmr.msra.gmra.mrb[16].mxu1 %v944_v21 }
 0x2f0   : > { %2520 = vmatpush3.bf16.msra.mxu1 %v2741_v38  ;;  %2535 = vmatprep.mubr.msk.bf16.mxu1 %vm2786_vm0, %v2785_v1  ;;  %v1553_v38 = vadd.s32 4294967295, %v3207_v37 }
 0x2f1   : > { %2521 = vmatprep.subr.bf16.mxu1 %v2785_v1 }
 0x2f2   : > { %vm1554_vm10 = vcmp.eq.s32.totalorder %v2878_v3, %v1553_v38 }
 0x2f4   : > { %2522 = vmatpush3.bf16.msra.mxu1 %v2742_v39  ;;  %v1545_v39 = vsub.s32 0, %v2876_v2  ;;  %v2235_v2 = vsel %vm1618_vm11, 1.0, %v2785_v1 }
 0x2f5   : > { %2523 = vmatprep.subr.bf16.mxu1 %v2785_v1  ;;  %v1621_v48 = vpack.c.bf16 %v2235_v2, %v2235_v2 }
 0x2f8   : > { %2524 = vmatpush3.bf16.msra.mxu1 %v2743_v40 }
 0x2f9   : > { %2525 = vmatprep.subr.bf16.mxu1 %v2785_v1 }
 0x2fc   : > { %2526 = vmatpush3.bf16.msra.mxu1 %v2744_v41 }
 0x2fd   : > { %2527 = vmatprep.subr.bf16.mxu1 %v2785_v1 }
 0x300   : > { %2528 = vmatpush3.bf16.msra.mxu1 %v2745_v42 }
 0x301   : > { %2529 = vmatprep.subr.bf16.mxu1 %v2785_v1 }
 0x304   : > { %2530 = vmatpush3.bf16.msra.mxu1 %v2746_v43 }
 0x305   : > { %2531 = vmatprep.subr.bf16.mxu1 %v2785_v1 }
 0x308   : > { %2532 = vmatpush3.bf16.msra.mxu1 %v2747_v44 }
 0x309   : > { %2533 = vmatprep.subr.bf16.mxu1 %v2785_v1 }
 0x30c   : > { %2534 = vmatpush3.bf16.msra.mxu1 %v2748_v45  ;;  %v2233_v45 = vsel %vm1554_vm10, 1.0, %v2785_v1 }
 0x30d   : > { %2591 = vmatprep.subr.bf16.mxu1 %v2785_v1  ;;  %v1557_v47 = vpack.c.bf16 %v2233_v45, %v2233_v45 }
 0x30f   : > { %2536 = vmatmul.mubr.bf16.vlgmr.msra.gmra.mrb[16].mxu1 %v1239_v23  ;;  %v1391_v23 = vld [vmem:[%s3338_s11] sm:$0x1] }
 0x310   : > { %2607 = vmatprep.mubr.msk.bf16.mxu1 %vm2786_vm0, %v2785_v1  ;;  %2592 = vmatpush3.bf16.msra.mxu1 %v2750_v31 }
 0x311   : > { %2593 = vmatprep.subr.bf16.mxu1 %v2785_v1 }
 0x314   : > { %2594 = vmatpush3.bf16.msra.mxu1 %v2752_v32 }
 0x315   : > { %2595 = vmatprep.subr.bf16.mxu1 %v2785_v1 }
 0x318   : > { %2596 = vmatpush3.bf16.msra.mxu1 %v2754_v33 }
 0x319   : > { %2597 = vmatprep.subr.bf16.mxu1 %v2785_v1 }
 0x31c   : > { %2598 = vmatpush3.bf16.msra.mxu1 %v2756_v34 }
 0x31d   : > { %2599 = vmatprep.subr.bf16.mxu1 %v2785_v1 }
 0x320   : > { %2600 = vmatpush3.bf16.msra.mxu1 %v2758_v35 }
 0x321   : > { %2601 = vmatprep.subr.bf16.mxu1 %v2785_v1 }
 0x324   : > { %2602 = vmatpush3.bf16.msra.mxu1 %v2760_v36 }
 0x325   : > { %2603 = vmatprep.subr.bf16.mxu1 %v2785_v1 }
 0x328   : > { %2604 = vmatpush3.bf16.msra.mxu1 %v2762_v57 }
 0x329   : > { %2605 = vmatprep.subr.bf16.mxu1 %v2785_v1 }
 0x32c   : > { %2606 = vmatpush3.bf16.msra.mxu1 %v2764_v58 }
 0x32d   : > { %2631 = vmatprep.subr.bf16.mxu1 %v2785_v1 }
 0x3e2   : > { %v1339_v4 = vpop.f32.mrb[16].mxu1 }
 0x3e3   : > { %v1355_v6 = vmul.f32 %v2229_v0, %v1339_v4  ;;  %v2537_v7 = vpop.f32.mrb[17].mxu1  ;;  %v2766_v4 = vld [vmem:[%s3334_s7 + $0x88] sm:$0xff]  }
 0x3e4   : > { %v1342_v8 = vpop.f32.mrb[18].mxu1 }
 0x3e5   : > { %v1364_v9 = vadd.f32 %v2230_v5, %v1355_v6  ;;  %v1356_v10 = vmul.f32 %v2229_v0, %v1342_v8  ;;  %v2538_v11 = vpop.f32.mrb[19].mxu1 }
 0x3e7   : > { %v1365_v12 = vadd.f32 %v2230_v5, %v1356_v10  ;;  %v1366_v13 = vmax.f32 %v1364_v9, 0.0  ;;  %v1859_v5 = vadd.s32 1, %v3207_v37  ;;  %v2767_v9 = vld [vmem:[%s3334_s7 + $0x90] sm:$0xff]  }
 0x3e9   : > { %v1367_v14 = vmax.f32 %v1365_v12, 0.0  ;;  %vm1860_vm12 = vcmp.eq.s32.totalorder %v2878_v3, %v1859_v5  ;;  %v2768_v3 = vld [vmem:[%s3334_s7 + $0x98] sm:$0xff]  }
 0x3ea   : > { %v2269_v12 = vsel %vm1860_vm12, 1.0, %v2785_v1 }
 0x3eb   : > { %v1368_v15 = vadd.f32 %v1367_v14, %v1366_v13 }
 0x3ed   : > { %v1369_v16 = vrot.slane %v1368_v15, 4 }
 0x3ef   : > { %v1370_v17 = vadd.f32 %v1369_v16, %v1368_v15  ;;  %v2770_v15 = vld [vmem:[%s3334_s7 + $0xa8] sm:$0xff]   ;;  %v2771_v16 = vld [vmem:[%s3334_s7 + $0xb0] sm:$0xff]  }
 0x3f1   : > { %v1371_v18 = vrot.slane %v1370_v17, 2 }
 0x3f3   : > { %v1372_v19 = vadd.f32 %v1371_v18, %v1370_v17  ;;  %v2772_v17 = vld [vmem:[%s3334_s7 + $0xb8] sm:$0xff]  }
 0x3f5   : > { %v1373_v20 = vrot.slane %v1372_v19, 1 }
 0x3f7   : > { %v1374_v21 = vadd.f32 %v1373_v20, %v1372_v19 }
 0x3f9   : > { %2572 = vmatmul.mubr.f32.vlgmr.msra.gmra.mrb[12].mxu0 %v1374_v21 }
 0x3fa   : > { %2576 = vmatprep.mubr.msk.f32.mxu0 %vm2786_vm0, %v2785_v1  ;;  %2575 = vmatpush3.msra.mxu0 %v1468_v22 }
 0x3fb   : > { %2579 = vmatprep.subr.bf16.mxu0 %v2785_v1 }
 0x4cc   : > { %v1458_v24 = vpop.f32.mrb[12].mxu0 }
 0x4cd   : > { %v1459_v25 = vadd.f32 %v1458_v24, %v1391_v23  ;;  %v2573_v26 = vpop.f32.mrb[13].mxu0 }
 0x4cf   : > { %v2231_v27 = vmul.f32 -1.442695, %v1459_v25 }
 0x4d1   : > { %2773 = vpow2.f32 %v2231_v27 }
 0x4db   : > { %v2774_v28 = vpop.eup %2773 }
 0x4dc   : > { %v1465_v29 = vadd.f32 1.0, %v2774_v28 }
 0x4de   : > { %2775 = vrcp.f32 %v1465_v29 }
 0x4e8   : > { %v2776_v30 = vpop.eup %2775 }
 0x4e9   : > { %2577 = vmatmul.mubr.msk.f32.vlgmr.msra.gmra.mrb[14].mxu0 %vm1469_vm9, %v2776_v30  ;;  %v2296_v30 = vld [vmem:[%s3336_s9] ss:$0 sm:$0xff] }
 0x4ea   : > { %2581 = vmatprep.mubr.msk.bf16.mxu0 %vm2786_vm0, %v2785_v1 }
 0x5bc   : > { %v1539_v40 = vpop.f32.mrb[14].mxu0 }
 0x5bd   : > { %v1546_v41 = vrot.slane %v1539_v40, %v1545_v39  ;;  %v2578_v42 = vpop.f32.mrb[15].mxu0 }
 0x5bf   : > { %v1547_v43 = vmul.f32 %v1546_v41, %v1366_v13  ;;  %v1548_v44 = vmul.f32 %v1546_v41, %v1367_v14  ;;  %v1863_v13 = vpack.c.bf16 %v2269_v12, %v2269_v12  ;;  %v2769_v14 = vld [vmem:[%s3334_s7 + $0xa0] sm:$0xff]  }
 0x5c1   : > { %1549 = vst [vmem:[%s474_s19] sm:$0xff] %v1547_v43  ;;  %1550 = vst [vmem:[%s474_s19 + $0x8] sm:$0xff] %v1548_v44  ;;  %v3218_v46 = vpack.c.bf16 %v1548_v44, %v1547_v43 }
 0x5c3   : > { %2580 = vmatpush3.bf16.msra.mxu0 %v3218_v46 }
 0x5c4   : > { %2585 = vmatprep.subr.bf16.mxu0 %v2785_v1 }
 0x5c6   : > { %2582 = vmatmul.mubr.msk.bf16.vlgmr.msra.gmra.mrb[16].mxu0 %vm497_vm2, %v1557_v47 }
 0x5c7   : > { %2586 = vmatpush3.bf16.msra.mxu0 %v3218_v46  ;;  %2587 = vmatprep.mubr.msk.bf16.mxu0 %vm2786_vm0, %v2785_v1 }
 0x5c8   : > { %2611 = vmatprep.subr.bf16.mxu0 %v2785_v1 }
 0x5ce   : > { %2588 = vmatmul.mubr.msk.bf16.vlgmr.msra.gmra.mrb[20].mxu0 %vm497_vm2, %v1621_v48 }
 0x5cf   : > { %2612 = vmatpush3.bf16.msra.mxu0 %v2749_v49  ;;  %2627 = vmatprep.mubr.msk.bf16.mxu0 %vm2786_vm0, %v2785_v1 }
 0x5d0   : > { %2613 = vmatprep.subr.bf16.mxu0 %v2785_v1 }
 0x5d3   : > { %2614 = vmatpush3.bf16.msra.mxu0 %v2751_v50 }
 0x5d4   : > { %2615 = vmatprep.subr.bf16.mxu0 %v2785_v1 }
 0x5d7   : > { %2616 = vmatpush3.bf16.msra.mxu0 %v2753_v51 }
 0x5d8   : > { %2617 = vmatprep.subr.bf16.mxu0 %v2785_v1 }
 0x5db   : > { %2618 = vmatpush3.bf16.msra.mxu0 %v2755_v52 }
 0x5dc   : > { %2619 = vmatprep.subr.bf16.mxu0 %v2785_v1 }
 0x5df   : > { %2620 = vmatpush3.bf16.msra.mxu0 %v2757_v53 }
 0x5e0   : > { %2621 = vmatprep.subr.bf16.mxu0 %v2785_v1 }
 0x5e3   : > { %2622 = vmatpush3.bf16.msra.mxu0 %v2759_v54 }
 0x5e4   : > { %2623 = vmatprep.subr.bf16.mxu0 %v2785_v1 }
 0x5e7   : > { %2624 = vmatpush3.bf16.msra.mxu0 %v2761_v55 }
 0x5e8   : > { %2625 = vmatprep.subr.bf16.mxu0 %v2785_v1 }
 0x5eb   : > { %2626 = vmatpush3.bf16.msra.mxu0 %v2763_v56 }
 0x5ec   : > { %2637 = vmatprep.subr.bf16.mxu0 %v2785_v1 }
 0x699   : > { %v1595_v59 = vpop.f32.mrb[16].mxu0 }
 0x69a   : > { %v1601_v61 = vpack.c.bf16 %v1595_v59, %v1595_v59  ;;  %v2583_v62 = vpop.f32.mrb[17].mxu0 }
 0x69b   : > { %v1598_v63 = vpop.f32.mrb[18].mxu0 }
 0x69c   : > { %v2584_v0 = vpop.f32.mrb[19].mxu0  ;;  %2628 = vmatmul.mubr.bf16.vlgmr.msra.gmra.mrb[24].mxu0 %v1601_v61 }
 0x69d   : > { %2638 = vmatpush3.bf16.msra.mxu0 %v2765_v60  ;;  %2653 = vmatprep.mubr.msk.bf16.mxu0 %vm2786_vm0, %v2785_v1 }
 0x69e   : > { %2639 = vmatprep.subr.bf16.mxu0 %v2785_v1 }
 0x6a1   : > { %v1659_v6 = vpop.f32.mrb[20].mxu0  ;;  %2640 = vmatpush3.bf16.msra.mxu0 %v2766_v4 }
 0x6a2   : > { %v1665_v7 = vpack.c.bf16 %v1659_v6, %v1659_v6  ;;  %v2589_v8 = vpop.f32.mrb[21].mxu0  ;;  %2641 = vmatprep.subr.bf16.mxu0 %v2785_v1 }
 0x6a3   : > { %v1662_v10 = vpop.f32.mrb[22].mxu0 }
 0x6a4   : > { %2608 = vmatmul.mubr.bf16.vlgmr.msra.gmra.mrb[20].mxu1 %v1665_v7  ;;  %v2590_v11 = vpop.f32.mrb[23].mxu0 }
 0x6a5   : > { %2632 = vmatpush3.bf16.msra.mxu1 %v3218_v46  ;;  %2633 = vmatprep.mubr.msk.bf16.mxu1 %vm2786_vm0, %v2785_v1 }
 0x6a6   : > { %2642 = vmatpush3.bf16.msra.mxu0 %v2767_v9 }
 0x6a7   : > { %2643 = vmatprep.subr.bf16.mxu0 %v2785_v1 }
 0x6aa   : > { %2644 = vmatpush3.bf16.msra.mxu0 %v2768_v3 }
 0x6ab   : > { %2645 = vmatprep.subr.bf16.mxu0 %v2785_v1 }
 0x6ac   : > { %2634 = vmatmul.mubr.msk.bf16.vlgmr.msra.gmra.mrb[24].mxu1 %vm497_vm2, %v1863_v13 }
 0x6ae   : > { %2646 = vmatpush3.bf16.msra.mxu0 %v2769_v14 }
 0x6af   : > { %2647 = vmatprep.subr.bf16.mxu0 %v2785_v1 }
 0x6b2   : > { %2648 = vmatpush3.bf16.msra.mxu0 %v2770_v15 }
 0x6b3   : > { %2649 = vmatprep.subr.bf16.mxu0 %v2785_v1 }
 0x6b6   : > { %2650 = vmatpush3.bf16.msra.mxu0 %v2771_v16 }
 0x6b7   : > { %2651 = vmatprep.subr.bf16.mxu0 %v2785_v1  ;;  %v2295_v1 = vld [vmem:[%s3335_s8] ss:$0 sm:$0xff] }
 0x6ba   : > { %2652 = vmatpush3.bf16.msra.mxu0 %v2772_v17 }
 0x777   : > { %v1765_v18 = vpop.f32.mrb[20].mxu1 }
 0x778   : > { %v2609_v19 = vpop.f32.mrb[21].mxu1 }
 0x779   : > { %v1768_v20 = vpop.f32.mrb[22].mxu1 }
 0x77a   : > { %v2610_v21 = vpop.f32.mrb[23].mxu1 }
 0x77f   : > { %v1901_v22 = vpop.f32.mrb[24].mxu1 }
 0x780   : > { %v1907_v23 = vpack.c.bf16 %v1901_v22, %v1901_v22  ;;  %v2635_v24 = vpop.f32.mrb[25].mxu1 }
 0x781   : > { %v1904_v25 = vpop.f32.mrb[26].mxu1 }
 0x782   : > { %2654 = vmatmul.mubr.bf16.vlgmr.msra.gmra.mrb[24].mxu0 %v1907_v23  ;;  %v2636_v26 = vpop.f32.mrb[27].mxu1 }
 0x855   : > { %v2007_v27 = vpop.f32.mrb[24].mxu0 }
 0x856   : > { %v2681_v28 = vadd.f32 %v2007_v27, %v1765_v18  ;;  %v2655_v29 = vpop.f32.mrb[25].mxu0 }
 0x857   : > { %v2010_v31 = vpop.f32.mrb[26].mxu0 }
 0x858   : > { %v2021_v32 = vmul.f32 %v2681_v28, %v2295_v1  ;;  %v2656_v33 = vpop.f32.mrb[27].mxu0 }
 0x85a   : > { %v2029_v34 = vadd.f32 %v2296_v30, %v2021_v32 }
 0x85c   : > { %v2030_v35 = vmax.f32 %v2029_v34, 0.0 }
 0x85e   : > { %2031 = vst.msk [vmem:[%s478_s20] sm:$0xff] %vm636_vm8, %v2030_v35 }
 0x85f PF: > { %s25_s29 = sadd.s32 1, %s2783_s29  }
 0x860   : > { %p22_p4 = scmp.ge.s32.totalorder %s25_s29, 4  }
 0x862   :  { %24 = sbr.rel (!%p22_p4) target bundleno = 1 (0x1), region = 120 }

</bundles_post_ra>
